<compile_context>
chip_gen: v7x
topology: tpu7x:2x2x1
jax: 0.10.0
libtpu: 0.0.40
codegen_flags: <defaults>
</compile_context>

<pallas_src>
import functools

import jax
import jax.numpy as jnp
from jax import lax
from jax.experimental import pallas as pl
from jax.experimental.pallas import tpu as pltpu


def _round_up(x, m):
    return (x + m - 1) // m * m


def _pick_row_tile(hout, wout, cmid_pad, max_tile=8):
    """Largest divisor of hout <= max_tile whose accumulator tile stays small."""
    best = 1
    for d in range(1, min(hout, max_tile) + 1):
        if hout % d == 0 and d * wout * cmid_pad <= 32 * 1024:
            best = d
    return best


# ------------------------------ fused kernel ------------------------------- #

def _fused_block_kernel(*refs, H, W, Cin, Cmid_pad, Cout, k, stride, pad,
                        tile_ho, Wout, use_bc, shortcut):
    if use_bc:
        (x_ref, wbc_ref, bbc_ref, wdw_ref, bdw_ref,
         wpw_ref, bpw_ref, o_ref, mid_ref) = refs
    else:
        (x_ref, wdw_ref, bdw_ref, wpw_ref, bpw_ref, o_ref, mid_ref) = refs
        wbc_ref = bbc_ref = None

    h = pl.program_id(1)

    # ---- stage 1 (once per image): 1x1 expand + BN + ReLU6 into the
    # zero-padded VMEM canvas.  Spatial padding and the lane padding of Cmid
    # are produced here, so nothing extra ever touches HBM.
    @pl.when(h == 0)
    def _expand():
        mid_ref[...] = jnp.zeros_like(mid_ref)
        x = x_ref[...]                                        # (H, W, Cin)
        if use_bc:
            m = jnp.dot(x.reshape(H * W, Cin), wbc_ref[...],
                        preferred_element_type=jnp.float32)
            m = jnp.clip(m + bbc_ref[...], 0.0, 6.0)
            mid_ref[pl.ds(pad, H), pl.ds(pad, W), :] = m.reshape(H, W, Cmid_pad)
        else:
            mid_ref[pl.ds(pad, H), pl.ds(pad, W), pl.ds(0, Cin)] = x

    # ---- stage 2 (per row tile): kxk depthwise + BN + ReLU6, taps sliced
    # straight off the VMEM canvas ref.
    r0 = pl.multiple_of(h * tile_ho, tile_ho)     # first output row of the tile
    row_base = r0 * stride                        # top row in padded canvas
    span_h = (tile_ho - 1) * stride + 1
    span_w = (Wout - 1) * stride + 1

    acc = jnp.zeros((tile_ho, Wout, Cmid_pad), jnp.float32)
    for dy in range(k):
        for dx in range(k):
            w_tap = wdw_ref[pl.ds(dy * k + dx, 1), :]         # (1, Cmid_pad)
            if stride == 1:
                win = mid_ref[pl.ds(row_base + dy, tile_ho), pl.ds(dx, Wout), :]
            else:
                win = mid_ref[pl.ds(row_base + dy, span_h),
                              pl.ds(dx, span_w), :][::stride, ::stride, :]
            acc = acc + win * w_tap
    y_mid = jnp.clip(acc + bdw_ref[...], 0.0, 6.0)    # (tile_ho, Wout, Cmid_pad)

    # ---- stage 3 (per row tile): 1x1 project + BN (+ fused identity add).
    y = jnp.dot(y_mid.reshape(tile_ho * Wout, Cmid_pad), wpw_ref[...],
                preferred_element_type=jnp.float32)
    y = y + bpw_ref[...]
    if shortcut:
        res = x_ref[pl.ds(r0, tile_ho), :, :]         # (tile_ho, W, Cin), stride==1
        y = y + res.reshape(tile_ho * Wout, Cout)
    o_ref[...] = y.reshape(tile_ho, Wout, Cout)


# ----------------------------- parameter setup ----------------------------- #

def _fold_bn(gamma, beta, mean, var, eps):
    scale = gamma / jnp.sqrt(var + eps)
    return scale, beta - mean * scale


def init_params(key, in_ch, out_ch, k, expansion):
    mid = in_ch * expansion
    ks = jax.random.split(key, 15)

    def bn(i, c):
        return dict(
            gamma=1.0 + 0.1 * jax.random.normal(ks[i], (c,), jnp.float32),
            beta=0.1 * jax.random.normal(ks[i + 1], (c,), jnp.float32),
            mean=0.1 * jax.random.normal(ks[i + 2], (c,), jnp.float32),
            var=jnp.abs(jax.random.normal(ks[i + 3], (c,), jnp.float32)) + 0.5,
        )

    return {
        "bc_w": 0.2 * jax.random.normal(ks[0], (in_ch, mid), jnp.float32),
        "bc_bn": bn(1, mid),
        "dw_w": 0.2 * jax.random.normal(ks[5], (k * k, mid), jnp.float32),
        "dw_bn": bn(6, mid),
        "pw_w": 0.2 * jax.random.normal(ks[10], (mid, out_ch), jnp.float32),
        "pw_bn": bn(11, out_ch),
    }


# ------------------------------- forward pass ------------------------------ #

def proxyless_unit_forward(x_nchw, params, *, kernel_size, stride, bn_eps,
                           expansion, residual, shortcut):
    assert residual or shortcut
    if not residual:
        return x_nchw

    k = kernel_size
    pad = (k - 1) // 2
    x = jnp.transpose(x_nchw, (0, 2, 3, 1)).astype(jnp.float32)   # NHWC
    N, H, W, Cin = x.shape
    use_bc = expansion > 1
    Cmid = Cin * expansion if use_bc else Cin
    Cmid_pad = _round_up(Cmid, 128)          # lane-dense intermediates
    Cout = params["pw_w"].shape[1]
    Hout = (H + 2 * pad - k) // stride + 1
    Wout = (W + 2 * pad - k) // stride + 1
    if shortcut:
        assert stride == 1 and Cin == Cout and Hout == H and Wout == W, (
            "shortcut requires stride==1 and in_channels==out_channels")

    # Fold BN into conv weights/bias and zero-pad channels (tiny arrays).
    if use_bc:
        s, bias = _fold_bn(**params["bc_bn"], eps=bn_eps)
        w_bc = jnp.zeros((Cin, Cmid_pad), jnp.float32).at[:, :Cmid].set(
            params["bc_w"] * s[None, :])
        b_bc = jnp.zeros((1, Cmid_pad), jnp.float32).at[0, :Cmid].set(bias)
    s, bias = _fold_bn(**params["dw_bn"], eps=bn_eps)
    w_dw = jnp.zeros((k * k, Cmid_pad), jnp.float32).at[:, :Cmid].set(
        params["dw_w"] * s[None, :])
    b_dw = jnp.zeros((1, Cmid_pad), jnp.float32).at[0, :Cmid].set(bias)
    s, bias = _fold_bn(**params["pw_bn"], eps=bn_eps)
    w_pw = jnp.zeros((Cmid_pad, Cout), jnp.float32).at[:Cmid, :].set(
        params["pw_w"] * s[None, :])
    b_pw = bias.reshape(1, Cout).astype(jnp.float32)

    tile_ho = _pick_row_tile(Hout, Wout, Cmid_pad)
    n_h = Hout // tile_ho
    Hp, Wp = H + 2 * pad, W + 2 * pad

    in_specs = [pl.BlockSpec((None, H, W, Cin), lambda b, h: (b, 0, 0, 0))]
    args = [x]
    if use_bc:
        in_specs += [pl.BlockSpec((Cin, Cmid_pad), lambda b, h: (0, 0)),
                     pl.BlockSpec((1, Cmid_pad), lambda b, h: (0, 0))]
        args += [w_bc, b_bc]
    in_specs += [pl.BlockSpec((k * k, Cmid_pad), lambda b, h: (0, 0)),
                 pl.BlockSpec((1, Cmid_pad), lambda b, h: (0, 0)),
                 pl.BlockSpec((Cmid_pad, Cout), lambda b, h: (0, 0)),
                 pl.BlockSpec((1, Cout), lambda b, h: (0, 0))]
    args += [w_dw, b_dw, w_pw, b_pw]

    out_spec = pl.BlockSpec((None, tile_ho, Wout, Cout),
                            lambda b, h: (b, h, 0, 0))

    kernel = functools.partial(
        _fused_block_kernel, H=H, W=W, Cin=Cin, Cmid_pad=Cmid_pad, Cout=Cout,
        k=k, stride=stride, pad=pad, tile_ho=tile_ho, Wout=Wout,
        use_bc=use_bc, shortcut=shortcut)

    flops = 2 * N * ((H * W * Cin * Cmid if use_bc else 0)
                     + Hout * Wout * k * k * Cmid
                     + Hout * Wout * Cmid * Cout)
    weight_elems = sum(int(a.size) for a in args[1:])
    bytes_accessed = 4 * (int(x.size) + N * Hout * Wout * Cout + weight_elems)

    scratch_bytes = Hp * Wp * Cmid_pad * 4
    vmem_limit = max(32 * 1024 * 1024, scratch_bytes + 16 * 1024 * 1024)

    y = pl.pallas_call(
        kernel,
        out_shape=jax.ShapeDtypeStruct((N, Hout, Wout, Cout), jnp.float32),
        grid_spec=pltpu.PrefetchScalarGridSpec(
            num_scalar_prefetch=0,
            grid=(N, n_h),
            in_specs=in_specs,
            out_specs=out_spec,
            scratch_shapes=[pltpu.VMEM((Hp, Wp, Cmid_pad), jnp.float32)]),
        compiler_params=pltpu.CompilerParams(
            dimension_semantics=("parallel", "arbitrary"),
            vmem_limit_bytes=int(vmem_limit)),
        cost_estimate=pl.CostEstimate(flops=int(flops), transcendentals=0,
                                      bytes_accessed=int(bytes_accessed)),
    )(*args)

    return jnp.transpose(y, (0, 3, 1, 2))   # back to NCHW


# --------------------------- plain-JAX reference --------------------------- #

def _ref_forward(x_nchw, params, *, kernel_size, stride, bn_eps,
                 expansion, residual, shortcut):
    if not residual:
        return x_nchw
    padding = (kernel_size - 1) // 2
    x = jnp.transpose(x_nchw, (0, 2, 3, 1)).astype(jnp.float32)
    h = x
    if expansion > 1:
        s, b = _fold_bn(**params["bc_bn"], eps=bn_eps)
        h = jnp.clip(jnp.einsum("nhwc,co->nhwo", h,
                                params["bc_w"] * s[None, :]) + b, 0.0, 6.0)
    s, b = _fold_bn(**params["dw_bn"], eps=bn_eps)
    C = h.shape[-1]
    wdw = (params["dw_w"] * s[None, :]).reshape(kernel_size, kernel_size, 1, C)
    h = lax.conv_general_dilated(
        h, wdw, window_strides=(stride, stride),
        padding=((padding, padding), (padding, padding)),
        dimension_numbers=("NHWC", "HWIO", "NHWC"),
        feature_group_count=C)
    h = jnp.clip(h + b, 0.0, 6.0)
    s, b = _fold_bn(**params["pw_bn"], eps=bn_eps)
    y = jnp.einsum("nhwc,co->nhwo", h, params["pw_w"] * s[None, :]) + b
    if shortcut:
        y = y + x
    return jnp.transpose(y, (0, 3, 1, 2))


# ----------------------------------- main ----------------------------------- #

if __name__ == "__main__":
    # ProxylessUnit config: residual=True, shortcut=True  (stride=1, Cin==Cout)
    in_channels = 4
    out_channels = 4
    kernel_size = 3
    stride = 1
    bn_eps = 1e-5
    expansion = 3
    residual = True
    shortcut = True

    key = jax.random.PRNGKey(0)
    kx, kp = jax.random.split(key)
    x = jax.random.normal(kx, (2, in_channels, 16, 16), jnp.float32)  # NCHW
    params = init_params(kp, in_channels, out_channels, kernel_size, expansion)

    cfg = dict(kernel_size=kernel_size, stride=stride, bn_eps=bn_eps,
               expansion=expansion, residual=residual, shortcut=shortcut)

    out = jax.block_until_ready(proxyless_unit_forward(x, params, **cfg))
    ref = jax.block_until_ready(_ref_forward(x, params, **cfg))

    assert out.shape == ref.shape == (2, out_channels, 16, 16)
    max_err = float(jnp.max(jnp.abs(out - ref)))
    assert jnp.allclose(out, ref, atol=2e-4, rtol=2e-4), max_err

    print("KERNEL_OK")
</pallas_src>

<mosaic_0001>
module attributes {stable_mosaic.version = 11 : i64} {
  func.func @_fused_block_kernel(%arg0: i32, %arg1: i32, %arg2: memref<1x16x16x4xf32, #tpu.memory_space<vmem>>, %arg3: memref<4x128xf32, #tpu.memory_space<vmem>>, %arg4: memref<1x128xf32, #tpu.memory_space<vmem>>, %arg5: memref<9x128xf32, #tpu.memory_space<vmem>>, %arg6: memref<1x128xf32, #tpu.memory_space<vmem>>, %arg7: memref<128x4xf32, #tpu.memory_space<vmem>>, %arg8: memref<1x4xf32, #tpu.memory_space<vmem>>, %arg9: memref<1x8x16x4xf32, #tpu.memory_space<vmem>>, %arg10: memref<18x18x128xf32, #tpu.memory_space<vmem>>) attributes {dimension_semantics = [#tpu.dimension_semantics<parallel>, #tpu.dimension_semantics<arbitrary>], iteration_bounds = array<i64: 2, 2>, scalar_prefetch = 0 : i64, scratch_operands = 1 : i64, tpu.core_type = #tpu.core_type<tc>, window_params = [{transform_indices = @transform_0, window_bounds = array<i64: 1, 16, 16, 4>}, {pipeline_mode = #tpu.pipeline_mode<synchronous>, transform_indices = @transform_1, window_bounds = array<i64: 4, 128>}, {pipeline_mode = #tpu.pipeline_mode<synchronous>, transform_indices = @transform_2, window_bounds = array<i64: 1, 128>}, {pipeline_mode = #tpu.pipeline_mode<synchronous>, transform_indices = @transform_3, window_bounds = array<i64: 9, 128>}, {pipeline_mode = #tpu.pipeline_mode<synchronous>, transform_indices = @transform_4, window_bounds = array<i64: 1, 128>}, {pipeline_mode = #tpu.pipeline_mode<synchronous>, transform_indices = @transform_5, window_bounds = array<i64: 128, 4>}, {pipeline_mode = #tpu.pipeline_mode<synchronous>, transform_indices = @transform_6, window_bounds = array<i64: 1, 4>}, {transform_indices = @transform_7, window_bounds = array<i64: 1, 8, 16, 4>}]} {
    %c0_i32 = arith.constant 0 : i32
    %0 = arith.cmpi eq, %arg1, %c0_i32 : i32
    %1 = arith.extui %0 : i1 to i32
    %c0_i32_0 = arith.constant 0 : i32
    %2 = arith.cmpi ne, %1, %c0_i32_0 : i32
    scf.if %2 {
      %cst_52 = arith.constant 0.000000e+00 : f32
      %102 = vector.broadcast %cst_52 : f32 to vector<18x18x128xf32>
      %c0_53 = arith.constant 0 : index
      %c0_54 = arith.constant 0 : index
      %c0_55 = arith.constant 0 : index
      %103 = vector.load %arg10[%c0_53, %c0_54, %c0_55] : memref<18x18x128xf32, #tpu.memory_space<vmem>>, vector<18x18x128xf32>
      tpu.vector_store %arg10[%c0_53, %c0_54, %c0_55], %102 {strides = array<i32>} : memref<18x18x128xf32, #tpu.memory_space<vmem>>, vector<18x18x128xf32>,
      %c0_56 = arith.constant 0 : index
      %c0_57 = arith.constant 0 : index
      %c0_58 = arith.constant 0 : index
      %c0_59 = arith.constant 0 : index
      %104 = vector.load %arg2[%c0_56, %c0_57, %c0_58, %c0_59] : memref<1x16x16x4xf32, #tpu.memory_space<vmem>>, vector<1x16x16x4xf32>
      %105 = vector.shape_cast %104 : vector<1x16x16x4xf32> to vector<16x16x4xf32>
      %106 = vector.shape_cast %105 : vector<16x16x4xf32> to vector<256x4xf32>
      %c0_60 = arith.constant 0 : index
      %c0_61 = arith.constant 0 : index
      %107 = vector.load %arg3[%c0_60, %c0_61] : memref<4x128xf32, #tpu.memory_space<vmem>>, vector<4x128xf32>
      %cst_62 = arith.constant dense<0.000000e+00> : vector<256x128xf32>
      %108 = tpu.matmul %106, %107, %cst_62 {dimension_numbers = #tpu.dot_dimension_numbers<[1], [0], [0], [1], [0, 0, 1, 1], [], []>} : vector<256x4xf32>, vector<4x128xf32>, vector<256x128xf32> -> vector<256x128xf32>
      %c0_63 = arith.constant 0 : index
      %c0_64 = arith.constant 0 : index
      %109 = vector.load %arg4[%c0_63, %c0_64] : memref<1x128xf32, #tpu.memory_space<vmem>>, vector<1x128xf32>
      %110 = vector.broadcast %109 : vector<1x128xf32> to vector<256x128xf32>
      %111 = arith.addf %108, %110 : vector<256x128xf32>
      %cst_65 = arith.constant 0.000000e+00 : f32
      %cst_66 = arith.constant 6.000000e+00 : f32
      %112 = vector.broadcast %cst_65 : f32 to vector<256x128xf32>
      %113 = arith.maximumf %112, %111 : vector<256x128xf32>
      %114 = vector.broadcast %cst_66 : f32 to vector<256x128xf32>
      %115 = arith.minimumf %114, %113 : vector<256x128xf32>
      %116 = vector.shape_cast %115 : vector<256x128xf32> to vector<16x16x128xf32>
      %c1_67 = arith.constant 1 : index
      %c1_68 = arith.constant 1 : index
      %c0_69 = arith.constant 0 : index
      %117 = vector.load %arg10[%c1_67, %c1_68, %c0_69] : memref<18x18x128xf32, #tpu.memory_space<vmem>>, vector<16x16x128xf32>
      tpu.vector_store %arg10[%c1_67, %c1_68, %c0_69], %116 {strides = array<i32>} : memref<18x18x128xf32, #tpu.memory_space<vmem>>, vector<16x16x128xf32>,
    } else {
    }
    %c8_i32 = arith.constant 8 : i32
    %3 = arith.muli %arg1, %c8_i32 : i32
    %4 = tpu.assume_multiple %3, 8 : i32
    %c1_i32 = arith.constant 1 : i32
    %5 = arith.muli %4, %c1_i32 : i32
    %cst = arith.constant 0.000000e+00 : f32
    %6 = vector.broadcast %cst : f32 to vector<8x16x128xf32>
    %c0 = arith.constant 0 : index
    %c0_1 = arith.constant 0 : index
    %7 = vector.load %arg5[%c0, %c0_1] : memref<9x128xf32, #tpu.memory_space<vmem>>, vector<1x128xf32>
    %c0_i32_2 = arith.constant 0 : i32
    %8 = arith.addi %5, %c0_i32_2 : i32
    %9 = arith.index_cast %8 : i32 to index
    %c0_3 = arith.constant 0 : index
    %c0_4 = arith.constant 0 : index
    %10 = vector.load %arg10[%9, %c0_3, %c0_4] : memref<18x18x128xf32, #tpu.memory_space<vmem>>, vector<8x16x128xf32>
    %11 = vector.shape_cast %7 : vector<1x128xf32> to vector<1x1x128xf32>
    %12 = vector.broadcast %11 : vector<1x1x128xf32> to vector<8x16x128xf32>
    %13 = arith.mulf %10, %12 : vector<8x16x128xf32>
    %14 = arith.addf %6, %13 : vector<8x16x128xf32>
    %c1 = arith.constant 1 : index
    %c0_5 = arith.constant 0 : index
    %15 = vector.load %arg5[%c1, %c0_5] : memref<9x128xf32, #tpu.memory_space<vmem>>, vector<1x128xf32>
    %c0_i32_6 = arith.constant 0 : i32
    %16 = arith.addi %5, %c0_i32_6 : i32
    %17 = arith.index_cast %16 : i32 to index
    %c1_7 = arith.constant 1 : index
    %c0_8 = arith.constant 0 : index
    %18 = vector.load %arg10[%17, %c1_7, %c0_8] : memref<18x18x128xf32, #tpu.memory_space<vmem>>, vector<8x16x128xf32>
    %19 = vector.shape_cast %15 : vector<1x128xf32> to vector<1x1x128xf32>
    %20 = vector.broadcast %19 : vector<1x1x128xf32> to vector<8x16x128xf32>
    %21 = arith.mulf %18, %20 : vector<8x16x128xf32>
    %22 = arith.addf %14, %21 : vector<8x16x128xf32>
    %c2 = arith.constant 2 : index
    %c0_9 = arith.constant 0 : index
    %23 = vector.load %arg5[%c2, %c0_9] : memref<9x128xf32, #tpu.memory_space<vmem>>, vector<1x128xf32>
    %c0_i32_10 = arith.constant 0 : i32
    %24 = arith.addi %5, %c0_i32_10 : i32
    %25 = arith.index_cast %24 : i32 to index
    %c2_11 = arith.constant 2 : index
    %c0_12 = arith.constant 0 : index
    %26 = vector.load %arg10[%25, %c2_11, %c0_12] : memref<18x18x128xf32, #tpu.memory_space<vmem>>, vector<8x16x128xf32>
    %27 = vector.shape_cast %23 : vector<1x128xf32> to vector<1x1x128xf32>
    %28 = vector.broadcast %27 : vector<1x1x128xf32> to vector<8x16x128xf32>
    %29 = arith.mulf %26, %28 : vector<8x16x128xf32>
    %30 = arith.addf %22, %29 : vector<8x16x128xf32>
    %c3 = arith.constant 3 : index
    %c0_13 = arith.constant 0 : index
    %31 = vector.load %arg5[%c3, %c0_13] : memref<9x128xf32, #tpu.memory_space<vmem>>, vector<1x128xf32>
    %c1_i32_14 = arith.constant 1 : i32
    %32 = arith.addi %5, %c1_i32_14 : i32
    %33 = arith.index_cast %32 : i32 to index
    %c0_15 = arith.constant 0 : index
    %c0_16 = arith.constant 0 : index
    %34 = vector.load %arg10[%33, %c0_15, %c0_16] : memref<18x18x128xf32, #tpu.memory_space<vmem>>, vector<8x16x128xf32>
    %35 = vector.shape_cast %31 : vector<1x128xf32> to vector<1x1x128xf32>
    %36 = vector.broadcast %35 : vector<1x1x128xf32> to vector<8x16x128xf32>
    %37 = arith.mulf %34, %36 : vector<8x16x128xf32>
    %38 = arith.addf %30, %37 : vector<8x16x128xf32>
    %c4 = arith.constant 4 : index
    %c0_17 = arith.constant 0 : index
    %39 = vector.load %arg5[%c4, %c0_17] : memref<9x128xf32, #tpu.memory_space<vmem>>, vector<1x128xf32>
    %c1_i32_18 = arith.constant 1 : i32
    %40 = arith.addi %5, %c1_i32_18 : i32
    %41 = arith.index_cast %40 : i32 to index
    %c1_19 = arith.constant 1 : index
    %c0_20 = arith.constant 0 : index
    %42 = vector.load %arg10[%41, %c1_19, %c0_20] : memref<18x18x128xf32, #tpu.memory_space<vmem>>, vector<8x16x128xf32>
    %43 = vector.shape_cast %39 : vector<1x128xf32> to vector<1x1x128xf32>
    %44 = vector.broadcast %43 : vector<1x1x128xf32> to vector<8x16x128xf32>
    %45 = arith.mulf %42, %44 : vector<8x16x128xf32>
    %46 = arith.addf %38, %45 : vector<8x16x128xf32>
    %c5 = arith.constant 5 : index
    %c0_21 = arith.constant 0 : index
    %47 = vector.load %arg5[%c5, %c0_21] : memref<9x128xf32, #tpu.memory_space<vmem>>, vector<1x128xf32>
    %c1_i32_22 = arith.constant 1 : i32
    %48 = arith.addi %5, %c1_i32_22 : i32
    %49 = arith.index_cast %48 : i32 to index
    %c2_23 = arith.constant 2 : index
    %c0_24 = arith.constant 0 : index
    %50 = vector.load %arg10[%49, %c2_23, %c0_24] : memref<18x18x128xf32, #tpu.memory_space<vmem>>, vector<8x16x128xf32>
    %51 = vector.shape_cast %47 : vector<1x128xf32> to vector<1x1x128xf32>
    %52 = vector.broadcast %51 : vector<1x1x128xf32> to vector<8x16x128xf32>
    %53 = arith.mulf %50, %52 : vector<8x16x128xf32>
    %54 = arith.addf %46, %53 : vector<8x16x128xf32>
    %c6 = arith.constant 6 : index
    %c0_25 = arith.constant 0 : index
    %55 = vector.load %arg5[%c6, %c0_25] : memref<9x128xf32, #tpu.memory_space<vmem>>, vector<1x128xf32>
    %c2_i32 = arith.constant 2 : i32
    %56 = arith.addi %5, %c2_i32 : i32
    %57 = arith.index_cast %56 : i32 to index
    %c0_26 = arith.constant 0 : index
    %c0_27 = arith.constant 0 : index
    %58 = vector.load %arg10[%57, %c0_26, %c0_27] : memref<18x18x128xf32, #tpu.memory_space<vmem>>, vector<8x16x128xf32>
    %59 = vector.shape_cast %55 : vector<1x128xf32> to vector<1x1x128xf32>
    %60 = vector.broadcast %59 : vector<1x1x128xf32> to vector<8x16x128xf32>
    %61 = arith.mulf %58, %60 : vector<8x16x128xf32>
    %62 = arith.addf %54, %61 : vector<8x16x128xf32>
    %c7 = arith.constant 7 : index
    %c0_28 = arith.constant 0 : index
    %63 = vector.load %arg5[%c7, %c0_28] : memref<9x128xf32, #tpu.memory_space<vmem>>, vector<1x128xf32>
    %c2_i32_29 = arith.constant 2 : i32
    %64 = arith.addi %5, %c2_i32_29 : i32
    %65 = arith.index_cast %64 : i32 to index
    %c1_30 = arith.constant 1 : index
    %c0_31 = arith.constant 0 : index
    %66 = vector.load %arg10[%65, %c1_30, %c0_31] : memref<18x18x128xf32, #tpu.memory_space<vmem>>, vector<8x16x128xf32>
    %67 = vector.shape_cast %63 : vector<1x128xf32> to vector<1x1x128xf32>
    %68 = vector.broadcast %67 : vector<1x1x128xf32> to vector<8x16x128xf32>
    %69 = arith.mulf %66, %68 : vector<8x16x128xf32>
    %70 = arith.addf %62, %69 : vector<8x16x128xf32>
    %c8 = arith.constant 8 : index
    %c0_32 = arith.constant 0 : index
    %71 = vector.load %arg5[%c8, %c0_32] : memref<9x128xf32, #tpu.memory_space<vmem>>, vector<1x128xf32>
    %c2_i32_33 = arith.constant 2 : i32
    %72 = arith.addi %5, %c2_i32_33 : i32
    %73 = arith.index_cast %72 : i32 to index
    %c2_34 = arith.constant 2 : index
    %c0_35 = arith.constant 0 : index
    %74 = vector.load %arg10[%73, %c2_34, %c0_35] : memref<18x18x128xf32, #tpu.memory_space<vmem>>, vector<8x16x128xf32>
    %75 = vector.shape_cast %71 : vector<1x128xf32> to vector<1x1x128xf32>
    %76 = vector.broadcast %75 : vector<1x1x128xf32> to vector<8x16x128xf32>
    %77 = arith.mulf %74, %76 : vector<8x16x128xf32>
    %78 = arith.addf %70, %77 : vector<8x16x128xf32>
    %c0_36 = arith.constant 0 : index
    %c0_37 = arith.constant 0 : index
    %79 = vector.load %arg6[%c0_36, %c0_37] : memref<1x128xf32, #tpu.memory_space<vmem>>, vector<1x128xf32>
    %80 = vector.shape_cast %79 : vector<1x128xf32> to vector<1x1x128xf32>
    %81 = vector.broadcast %80 : vector<1x1x128xf32> to vector<8x16x128xf32>
    %82 = arith.addf %78, %81 : vector<8x16x128xf32>
    %cst_38 = arith.constant 0.000000e+00 : f32
    %cst_39 = arith.constant 6.000000e+00 : f32
    %83 = vector.broadcast %cst_38 : f32 to vector<8x16x128xf32>
    %84 = arith.maximumf %83, %82 : vector<8x16x128xf32>
    %85 = vector.broadcast %cst_39 : f32 to vector<8x16x128xf32>
    %86 = arith.minimumf %85, %84 : vector<8x16x128xf32>
    %87 = vector.shape_cast %86 : vector<8x16x128xf32> to vector<128x128xf32>
    %c0_40 = arith.constant 0 : index
    %c0_41 = arith.constant 0 : index
    %88 = vector.load %arg7[%c0_40, %c0_41] : memref<128x4xf32, #tpu.memory_space<vmem>>, vector<128x4xf32>
    %cst_42 = arith.constant dense<0.000000e+00> : vector<128x4xf32>
    %89 = tpu.matmul %87, %88, %cst_42 {dimension_numbers = #tpu.dot_dimension_numbers<[1], [0], [0], [1], [0, 0, 1, 1], [], []>} : vector<128x128xf32>, vector<128x4xf32>, vector<128x4xf32> -> vector<128x4xf32>
    %c0_43 = arith.constant 0 : index
    %c0_44 = arith.constant 0 : index
    %90 = vector.load %arg8[%c0_43, %c0_44] : memref<1x4xf32, #tpu.memory_space<vmem>>, vector<1x4xf32>
    %91 = vector.broadcast %90 : vector<1x4xf32> to vector<128x4xf32>
    %92 = arith.addf %89, %91 : vector<128x4xf32>
    %c0_45 = arith.constant 0 : index
    %93 = arith.index_cast %4 : i32 to index
    %c0_46 = arith.constant 0 : index
    %c0_47 = arith.constant 0 : index
    %94 = vector.load %arg2[%c0_45, %93, %c0_46, %c0_47] : memref<1x16x16x4xf32, #tpu.memory_space<vmem>>, vector<1x8x16x4xf32>
    %95 = vector.shape_cast %94 : vector<1x8x16x4xf32> to vector<8x16x4xf32>
    %96 = vector.shape_cast %95 : vector<8x16x4xf32> to vector<128x4xf32>
    %97 = arith.addf %92, %96 : vector<128x4xf32>
    %98 = vector.shape_cast %97 : vector<128x4xf32> to vector<8x16x4xf32>
    %c0_48 = arith.constant 0 : index
    %c0_49 = arith.constant 0 : index
    %c0_50 = arith.constant 0 : index
    %c0_51 = arith.constant 0 : index
    %99 = vector.load %arg9[%c0_48, %c0_49, %c0_50, %c0_51] : memref<1x8x16x4xf32, #tpu.memory_space<vmem>>, vector<1x8x16x4xf32>
    %100 = vector.shape_cast %99 : vector<1x8x16x4xf32> to vector<8x16x4xf32>
    %101 = vector.shape_cast %98 : vector<8x16x4xf32> to vector<1x8x16x4xf32>
    tpu.vector_store %arg9[%c0_48, %c0_49, %c0_50, %c0_51], %101 {strides = array<i32>} : memref<1x8x16x4xf32, #tpu.memory_space<vmem>>, vector<1x8x16x4xf32>,
    return
  }
  func.func @transform_0(%arg0: i32, %arg1: i32) -> (i32, i32, i32, i32) {
    %c0_i32 = arith.constant 0 : i32
    %c0_i32_0 = arith.constant 0 : i32
    %c0_i32_1 = arith.constant 0 : i32
    %c0_i32_2 = arith.constant 0 : i32
    return %arg0, %c0_i32, %c0_i32_0, %c0_i32_1 : i32, i32, i32, i32
  }
  func.func @transform_1(%arg0: i32, %arg1: i32) -> (i32, i32) {
    %c0_i32 = arith.constant 0 : i32
    %c0_i32_0 = arith.constant 0 : i32
    %c0_i32_1 = arith.constant 0 : i32
    return %c0_i32, %c0_i32_0 : i32, i32
  }
  func.func @transform_2(%arg0: i32, %arg1: i32) -> (i32, i32) {
    %c0_i32 = arith.constant 0 : i32
    %c0_i32_0 = arith.constant 0 : i32
    %c0_i32_1 = arith.constant 0 : i32
    return %c0_i32, %c0_i32_0 : i32, i32
  }
  func.func @transform_3(%arg0: i32, %arg1: i32) -> (i32, i32) {
    %c0_i32 = arith.constant 0 : i32
    %c0_i32_0 = arith.constant 0 : i32
    %c0_i32_1 = arith.constant 0 : i32
    return %c0_i32, %c0_i32_0 : i32, i32
  }
  func.func @transform_4(%arg0: i32, %arg1: i32) -> (i32, i32) {
    %c0_i32 = arith.constant 0 : i32
    %c0_i32_0 = arith.constant 0 : i32
    %c0_i32_1 = arith.constant 0 : i32
    return %c0_i32, %c0_i32_0 : i32, i32
  }
  func.func @transform_5(%arg0: i32, %arg1: i32) -> (i32, i32) {
    %c0_i32 = arith.constant 0 : i32
    %c0_i32_0 = arith.constant 0 : i32
    %c0_i32_1 = arith.constant 0 : i32
    return %c0_i32, %c0_i32_0 : i32, i32
  }
  func.func @transform_6(%arg0: i32, %arg1: i32) -> (i32, i32) {
    %c0_i32 = arith.constant 0 : i32
    %c0_i32_0 = arith.constant 0 : i32
    %c0_i32_1 = arith.constant 0 : i32
    return %c0_i32, %c0_i32_0 : i32, i32
  }
  func.func @transform_7(%arg0: i32, %arg1: i32) -> (i32, i32, i32, i32) {
    %c0_i32 = arith.constant 0 : i32
    %c0_i32_0 = arith.constant 0 : i32
    %c0_i32_1 = arith.constant 0 : i32
    return %arg0, %arg1, %c0_i32, %c0_i32_0 : i32, i32, i32, i32
  }
}

</mosaic_0001>

<bundles_post_ra>
// kernel: tpu_custom_call.1
= control target key start
LH: loop header
LB: loop body
LE: loop exit
PB: predicated region body
PF: predicated region fallthrough
CT: control target
= control target key end

     0   :  { %s2194_s24 = smov 0   ;;  %s2196_s25 = smov 0   ;;  %s3033_s0 = inlined_call_operand.vmem [shape: f32[2,16,16,4], index: 0, kind: input, shape index: {}]   ;;  %s3034_s1 = inlined_call_operand.vmem [shape: f32[4,128], index: 1, kind: input, shape index: {}]   ;;  %s3035_s2 = inlined_call_operand.vmem [shape: f32[1,128], index: 2, kind: input, shape index: {}]   ;;  %s3036_s3 = inlined_call_operand.vmem [shape: f32[9,128], index: 3, kind: input, shape index: {}]   ;;  %s3037_s4 = inlined_call_operand.vmem [shape: f32[1,128], index: 4, kind: input, shape index: {}]   ;;  %s3038_s5 = inlined_call_operand.vmem [shape: f32[128,4], index: 5, kind: input, shape index: {}]   ;;  %s3039_s6 = inlined_call_operand.vmem [shape: f32[1,4], index: 6, kind: input, shape index: {}]   ;;  %s3040_s7 = inlined_call_operand.vmem [shape: f32[2,16,16,4], index: 7, kind: output, shape index: {}]  }
   0x1   :  { %s2198_s26 = smov 0   ;;  %s2200_s27 = smov 0  }
   0x2   :  { %s2202_s28 = smov 0  }
   0x3 LB: > { %s26_s29 = sadd.s32 1, %s2143_s26  ;;  %s29_s30 = sadd.s32 1, %s2147_s27  ;;  %s2151_s28 = sphi %s2202_s28, %s17_s28   ;;  %s2147_s27 = sphi %s2200_s27, %s3056_s27   ;;  %s2143_s26 = sphi %s2198_s26, %s3055_s26   ;;  %s2139_s25 = sphi %s2196_s25, %s3054_s25   ;;  %s2135_s24 = sphi %s2194_s24, %s3053_s24  }
   0x4   : > { %p27_p0 = scmp.ge.s32.totalorder %s26_s29, 2  ;;  %p1691_p1 = scmp.ge.s32.totalorder %s2151_s28, 1 }
   0x5   : > { %p251_p2 = scmp.lt.s32.totalorder %s2151_s28, 5 }
   0x6   : > { %s3058_s29 = smov (%p27_p0, %s26_s29), 0  ;;  %s3060_s30 = smov (!%p27_p0, %s29_s30), %s2147_s27 }
   0x7   : > { %p252_p3 = pnand %p1691_p1, %p251_p2  ;;  %p31_p4 = scmp.ge.s32.totalorder %s3060_s30, 2 }
   0x9   : > { %s3062_s30 = smov (%p31_p4, %s3060_s30), 0  ;;  %255 = sbr.rel (%p252_p3) target bundleno = 594 (0x252), region = 48 }
  0x10   : > { %p288_p5 = scmp.lt.s32.totalorder %s2139_s25, 1  ;;  %s1694_s8 = sshll.u32 %s2135_s24, 3 }
  0x11   : > { %p296_p6 = scmp.lt.s32.totalorder %s1694_s8, 15  ;;  %p1698_p7 = scmp.ne.s32.totalorder %s2135_s24, 0 }
  0x12   : > { %s3064_s25 = smov (!%p288_p5, %s2139_s25), 1  ;;  %v394_v0 = vld [vmem:[%s3034_s1] sm:$0xf] (!%p1698_p7)  ;;  %vm499_vm0 = vcmask (!%p1698_p7), 1043456   ;;  %vm402_vm1 = vcmask (!%p1698_p7), 31744   ;;  %v2153_v7 = vmov (!%p1698_p7), 0.0  }
  0x13   : > { %s3066_s8 = smov (!%p296_p6, %s1694_s8), 15  ;;  %s1849_s9 = sshll.u32 %s3064_s25, 8  ;;  %1916 = vmatprep.subr.msk.mxu0 (!%p1698_p7), %vm499_vm0, %v394_v0  ;;  %2054 = vmatprep.subr.msk.mxu1 (!%p1698_p7), %vm499_vm0, %v394_v0  ;;  %308 = vst [vmem:[#allocation2] sm:$0xff] (!%p1698_p7), %v2153_v7  ;;  %309 = vst [vmem:[#allocation2 + $0x8] sm:$0xff] (!%p1698_p7), %v2153_v7  ;;  %v2320_v34 = vld [vmem:[%s3035_s2] ss:$0 sm:$0xff] (!%p1698_p7) }
  0x14   : > { %s1696_s10 = sshll.u32 %s3064_s25, 5  ;;  %s2230_s13 = scalar_lea.vmem %s3033_s0, %s1849_s9  ;;  %1917 = vmatpush3.msk.msra.mxu0 (!%p1698_p7), %vm499_vm0, %v394_v0  ;;  %2055 = vmatpush3.msk.msra.mxu1 (!%p1698_p7), %vm499_vm0, %v394_v0  ;;  %310 = vst [vmem:[#allocation2 + $0x10] sm:$0x3] (!%p1698_p7), %v2153_v7  ;;  %312 = vst [vmem:[#allocation2 + $0x20] sm:$0xff] (!%p1698_p7), %v2153_v7 }
  0x15   : > { %s1695_s14 = sshll.u32 %s3066_s8, 1  ;;  %307 = sbr.rel (%p1698_p7) target bundleno = 272 (0x110), region = 52  ;;  %v2242_v1 = vld [vmem:[%s2230_s13] sm:$0xff] (!%p1698_p7)  ;;  %v2248_v3 = vld [vmem:[%s2230_s13 + $0x8] sm:$0xff] (!%p1698_p7)  ;;  %v364_v5 = vld [vmem:[%s2230_s13 + $0x10] sm:$0xff] (!%p1698_p7)  ;;  %359 = vst [vmem:[#allocation2 + $0x198] sm:$0xff] (!%p1698_p7), %v2153_v7 }
  0x16   : > { %s300_s15 = sadd.s32 %s1696_s10, %s1695_s14  ;;  %v2245_v2 = vld [vmem:[%s2230_s13 + $0x80] sm:$0xff] (!%p1698_p7)  ;;  %v2251_v4 = vld [vmem:[%s2230_s13 + $0x88] sm:$0xff] (!%p1698_p7)  ;;  %v380_v6 = vld [vmem:[%s2230_s13 + $0x90] sm:$0xff] (!%p1698_p7)  ;;  %313 = vst [vmem:[#allocation2 + $0x28] sm:$0x3] (!%p1698_p7), %v2153_v7  ;;  %1918 = vmatprep.mubr.msk.f32.mxu0 (!%p1698_p7), %vm402_vm1, %v2242_v1 }
  0x17   : > { %s1697_s16 = sshll.u32 %s300_s15, 3  ;;  %360 = vst [vmem:[#allocation2 + $0x1a0] sm:$0xff] (!%p1698_p7), %v2153_v7  ;;  %361 = vst [vmem:[#allocation2 + $0x1a8] sm:$0x3] (!%p1698_p7), %v2153_v7  ;;  %1942 = vmatprep.mubr.msk.f32.mxu1 (!%p1698_p7), %vm402_vm1, %v2245_v2  ;;  %1919 = vmatmul.mubr.msk.f32.vlgmr.msra.gmra.mrb[0].mxu0 (!%p1698_p7), %vm402_vm1, %v2248_v3  ;;  %v365_v8 = vld [vmem:[%s2230_s13 + $0x18] sm:$0xff] (!%p1698_p7)  ;;  %v366_v10 = vld [vmem:[%s2230_s13 + $0x20] sm:$0xff] (!%p1698_p7) }
  0x18   : > { %s2235_s19 = scalar_lea.vmem %s3040_s7, %s1697_s16  ;;  %311 = vst [vmem:[#allocation2 + $0x18] sm:$0xff] (!%p1698_p7), %v2153_v7  ;;  %314 = vst [vmem:[#allocation2 + $0x30] sm:$0xff] (!%p1698_p7), %v2153_v7  ;;  %1943 = vmatmul.mubr.msk.f32.vlgmr.msra.gmra.mrb[0].mxu1 (!%p1698_p7), %vm402_vm1, %v2251_v4  ;;  %1921 = vmatprep.mubr.msk.f32.mxu0 (!%p1698_p7), %vm402_vm1, %v364_v5  ;;  %v381_v9 = vld [vmem:[%s2230_s13 + $0x98] sm:$0xff] (!%p1698_p7)  ;;  %v382_v11 = vld [vmem:[%s2230_s13 + $0xa0] sm:$0xff] (!%p1698_p7) }
  0x19   : > { %315 = vst [vmem:[#allocation2 + $0x38] sm:$0xff] (!%p1698_p7), %v2153_v7  ;;  %316 = vst [vmem:[#allocation2 + $0x40] sm:$0x3] (!%p1698_p7), %v2153_v7  ;;  %1945 = vmatprep.mubr.msk.f32.mxu1 (!%p1698_p7), %vm402_vm1, %v380_v6  ;;  %v367_v12 = vld [vmem:[%s2230_s13 + $0x28] sm:$0xff] (!%p1698_p7)  ;;  %v368_v14 = vld [vmem:[%s2230_s13 + $0x30] sm:$0xff] (!%p1698_p7) }
  0x1a   : > { %317 = vst [vmem:[#allocation2 + $0x48] sm:$0xff] (!%p1698_p7), %v2153_v7  ;;  %318 = vst [vmem:[#allocation2 + $0x50] sm:$0xff] (!%p1698_p7), %v2153_v7  ;;  %v383_v13 = vld [vmem:[%s2230_s13 + $0xa8] sm:$0xff] (!%p1698_p7)  ;;  %v384_v15 = vld [vmem:[%s2230_s13 + $0xb0] sm:$0xff] (!%p1698_p7) }
  0x1b   : > { %319 = vst [vmem:[#allocation2 + $0x58] sm:$0x3] (!%p1698_p7), %v2153_v7  ;;  %320 = vst [vmem:[#allocation2 + $0x60] sm:$0xff] (!%p1698_p7), %v2153_v7  ;;  %1922 = vmatmul.mubr.msk.f32.gmra.mrb[2].mxu0 (!%p1698_p7), %vm402_vm1, %v365_v8  ;;  %v369_v16 = vld [vmem:[%s2230_s13 + $0x38] sm:$0xff] (!%p1698_p7)  ;;  %v370_v18 = vld [vmem:[%s2230_s13 + $0x40] sm:$0xff] (!%p1698_p7) }
  0x1c   : > { %321 = vst [vmem:[#allocation2 + $0x68] sm:$0xff] %v2153_v7  ;;  %322 = vst [vmem:[#allocation2 + $0x70] sm:$0x3] %v2153_v7  ;;  %1946 = vmatmul.mubr.msk.f32.gmra.mrb[2].mxu1 %vm402_vm1, %v381_v9  ;;  %1924 = vmatprep.mubr.msk.f32.mxu0 %vm402_vm1, %v366_v10  ;;  %v385_v17 = vld [vmem:[%s2230_s13 + $0xb8] sm:$0xff]  ;;  %v386_v19 = vld [vmem:[%s2230_s13 + $0xc0] sm:$0xff] }
  0x1d   : > { %323 = vst [vmem:[#allocation2 + $0x78] sm:$0xff] %v2153_v7  ;;  %324 = vst [vmem:[#allocation2 + $0x80] sm:$0xff] %v2153_v7  ;;  %1948 = vmatprep.mubr.msk.f32.mxu1 %vm402_vm1, %v382_v11  ;;  %v371_v20 = vld [vmem:[%s2230_s13 + $0x48] sm:$0xff]  ;;  %v372_v22 = vld [vmem:[%s2230_s13 + $0x50] sm:$0xff] }
  0x1e   : > { %325 = vst [vmem:[#allocation2 + $0x88] sm:$0x3] %v2153_v7  ;;  %326 = vst [vmem:[#allocation2 + $0x90] sm:$0xff] %v2153_v7  ;;  %v387_v21 = vld [vmem:[%s2230_s13 + $0xc8] sm:$0xff]  ;;  %v388_v23 = vld [vmem:[%s2230_s13 + $0xd0] sm:$0xff] }
  0x1f   : > { %327 = vst [vmem:[#allocation2 + $0x98] sm:$0xff] %v2153_v7  ;;  %328 = vst [vmem:[#allocation2 + $0xa0] sm:$0x3] %v2153_v7  ;;  %1925 = vmatmul.mubr.msk.f32.gmra.mrb[4].mxu0 %vm402_vm1, %v367_v12  ;;  %v373_v24 = vld [vmem:[%s2230_s13 + $0x58] sm:$0xff]  ;;  %v374_v26 = vld [vmem:[%s2230_s13 + $0x60] sm:$0xff] }
  0x20   : > { %329 = vst [vmem:[#allocation2 + $0xa8] sm:$0xff] %v2153_v7  ;;  %330 = vst [vmem:[#allocation2 + $0xb0] sm:$0xff] %v2153_v7  ;;  %1949 = vmatmul.mubr.msk.f32.gmra.mrb[4].mxu1 %vm402_vm1, %v383_v13  ;;  %1927 = vmatprep.mubr.msk.f32.mxu0 %vm402_vm1, %v368_v14  ;;  %v389_v25 = vld [vmem:[%s2230_s13 + $0xd8] sm:$0xff]  ;;  %v390_v27 = vld [vmem:[%s2230_s13 + $0xe0] sm:$0xff] }
  0x21   : > { %331 = vst [vmem:[#allocation2 + $0xb8] sm:$0x3] %v2153_v7  ;;  %332 = vst [vmem:[#allocation2 + $0xc0] sm:$0xff] %v2153_v7  ;;  %1951 = vmatprep.mubr.msk.f32.mxu1 %vm402_vm1, %v384_v15  ;;  %v375_v28 = vld [vmem:[%s2230_s13 + $0x68] sm:$0xff]  ;;  %v376_v30 = vld [vmem:[%s2230_s13 + $0x70] sm:$0xff] }
  0x22   : > { %333 = vst [vmem:[#allocation2 + $0xc8] sm:$0xff] %v2153_v7  ;;  %334 = vst [vmem:[#allocation2 + $0xd0] sm:$0x3] %v2153_v7  ;;  %v391_v29 = vld [vmem:[%s2230_s13 + $0xe8] sm:$0xff]  ;;  %v392_v31 = vld [vmem:[%s2230_s13 + $0xf0] sm:$0xff] }
  0x23   : > { %335 = vst [vmem:[#allocation2 + $0xd8] sm:$0xff] %v2153_v7  ;;  %336 = vst [vmem:[#allocation2 + $0xe0] sm:$0xff] %v2153_v7  ;;  %1928 = vmatmul.mubr.msk.f32.gmra.mrb[6].mxu0 %vm402_vm1, %v369_v16  ;;  %v377_v32 = vld [vmem:[%s2230_s13 + $0x78] sm:$0xff] }
  0x24   : > { %337 = vst [vmem:[#allocation2 + $0xe8] sm:$0x3] %v2153_v7  ;;  %338 = vst [vmem:[#allocation2 + $0xf0] sm:$0xff] %v2153_v7  ;;  %1952 = vmatmul.mubr.msk.f32.gmra.mrb[6].mxu1 %vm402_vm1, %v385_v17  ;;  %1930 = vmatprep.mubr.msk.f32.mxu0 %vm402_vm1, %v370_v18  ;;  %v393_v33 = vld [vmem:[%s2230_s13 + $0xf8] sm:$0xff] }
  0x25   : > { %339 = vst [vmem:[#allocation2 + $0xf8] sm:$0xff] %v2153_v7  ;;  %340 = vst [vmem:[#allocation2 + $0x100] sm:$0x3] %v2153_v7  ;;  %1954 = vmatprep.mubr.msk.f32.mxu1 %vm402_vm1, %v386_v19 }
  0x26   : > { %341 = vst [vmem:[#allocation2 + $0x108] sm:$0xff] %v2153_v7  ;;  %342 = vst [vmem:[#allocation2 + $0x110] sm:$0xff] %v2153_v7 }
  0x27   : > { %343 = vst [vmem:[#allocation2 + $0x118] sm:$0x3] %v2153_v7  ;;  %344 = vst [vmem:[#allocation2 + $0x120] sm:$0xff] %v2153_v7  ;;  %1931 = vmatmul.mubr.msk.f32.gmra.mrb[8].mxu0 %vm402_vm1, %v371_v20 }
  0x28   : > { %345 = vst [vmem:[#allocation2 + $0x128] sm:$0xff] %v2153_v7  ;;  %346 = vst [vmem:[#allocation2 + $0x130] sm:$0x3] %v2153_v7  ;;  %1955 = vmatmul.mubr.msk.f32.gmra.mrb[8].mxu1 %vm402_vm1, %v387_v21  ;;  %1933 = vmatprep.mubr.msk.f32.mxu0 %vm402_vm1, %v372_v22 }
  0x29   : > { %347 = vst [vmem:[#allocation2 + $0x138] sm:$0xff] %v2153_v7  ;;  %348 = vst [vmem:[#allocation2 + $0x140] sm:$0xff] %v2153_v7  ;;  %1957 = vmatprep.mubr.msk.f32.mxu1 %vm402_vm1, %v388_v23 }
  0x2a   : > { %349 = vst [vmem:[#allocation2 + $0x148] sm:$0x3] %v2153_v7  ;;  %350 = vst [vmem:[#allocation2 + $0x150] sm:$0xff] %v2153_v7 }
  0x2b   : > { %351 = vst [vmem:[#allocation2 + $0x158] sm:$0xff] %v2153_v7  ;;  %352 = vst [vmem:[#allocation2 + $0x160] sm:$0x3] %v2153_v7  ;;  %1934 = vmatmul.mubr.msk.f32.gmra.mrb[10].mxu0 %vm402_vm1, %v373_v24 }
  0x2c   : > { %353 = vst [vmem:[#allocation2 + $0x168] sm:$0xff] %v2153_v7  ;;  %354 = vst [vmem:[#allocation2 + $0x170] sm:$0xff] %v2153_v7  ;;  %1958 = vmatmul.mubr.msk.f32.gmra.mrb[10].mxu1 %vm402_vm1, %v389_v25  ;;  %1936 = vmatprep.mubr.msk.f32.mxu0 %vm402_vm1, %v374_v26 }
  0x2d   : > { %355 = vst [vmem:[#allocation2 + $0x178] sm:$0x3] %v2153_v7  ;;  %356 = vst [vmem:[#allocation2 + $0x180] sm:$0xff] %v2153_v7  ;;  %1960 = vmatprep.mubr.msk.f32.mxu1 %vm402_vm1, %v390_v27 }
  0x2e   : > { %357 = vst [vmem:[#allocation2 + $0x188] sm:$0xff] %v2153_v7  ;;  %358 = vst [vmem:[#allocation2 + $0x190] sm:$0x3] %v2153_v7 }
  0x2f   : > { %1937 = vmatmul.mubr.msk.f32.gmra.mrb[12].mxu0 %vm402_vm1, %v375_v28 }
  0x30   : > { %1961 = vmatmul.mubr.msk.f32.gmra.mrb[12].mxu1 %vm402_vm1, %v391_v29  ;;  %1939 = vmatprep.mubr.msk.f32.mxu0 %vm402_vm1, %v376_v30 }
  0x31   : > { %1963 = vmatprep.mubr.msk.f32.mxu1 %vm402_vm1, %v392_v31 }
  0x33   : > { %1940 = vmatmul.mubr.msk.f32.gmra.mrb[14].mxu0 %vm402_vm1, %v377_v32 }
  0x34   : > { %1964 = vmatmul.mubr.msk.f32.gmra.mrb[14].mxu1 %vm402_vm1, %v393_v33 }
  0xea   : > { %v1920_v35 = vpop.f32.mrb[0].mxu0 }
  0xeb   : > { %v1944_v36 = vpop.f32.mrb[0].mxu1  ;;  %v575_v37 = vadd.f32 %v1920_v35, %v2320_v34  ;;  %v569_v39 = vpop.f32.mrb[1].mxu0 }
  0xec   : > { %v655_v38 = vadd.f32 %v1944_v36, %v2320_v34  ;;  %v649_v40 = vpop.f32.mrb[1].mxu1  ;;  %v570_v41 = vadd.f32 %v2320_v34, %v569_v39 }
  0xed   : > { %v650_v42 = vadd.f32 %v2320_v34, %v649_v40  ;;  %v729_v43 = vmax.f32 %v575_v37, 0.0 }
  0xee   : > { %v745_v44 = vmax.f32 %v655_v38, 0.0  ;;  %v728_v45 = vmax.f32 %v570_v41, 0.0  ;;  %v1923_v47 = vpop.f32.mrb[2].mxu0 }
  0xef   : > { %v744_v46 = vmax.f32 %v650_v42, 0.0  ;;  %v1947_v48 = vpop.f32.mrb[2].mxu1  ;;  %v761_v49 = vmin.f32 %v729_v43, 6.0  ;;  %v585_v51 = vadd.f32 %v1923_v47, %v2320_v34  ;;  %v579_v53 = vpop.f32.mrb[3].mxu0 }
  0xf0   : > { %v777_v50 = vmin.f32 %v745_v44, 6.0  ;;  %v665_v52 = vadd.f32 %v1947_v48, %v2320_v34  ;;  %v659_v54 = vpop.f32.mrb[3].mxu1  ;;  %v760_v55 = vmin.f32 %v728_v45, 6.0  ;;  %v580_v57 = vadd.f32 %v2320_v34, %v579_v53 }
  0xf1   : > { %v776_v56 = vmin.f32 %v744_v46, 6.0  ;;  %v660_v58 = vadd.f32 %v2320_v34, %v659_v54  ;;  %794 = vst [vmem:[#allocation2 + $0x21] sm:$0xff] %v761_v49  ;;  %v731_v59 = vmax.f32 %v585_v51, 0.0 }
  0xf2   : > { %810 = vst [vmem:[#allocation2 + $0xe1] sm:$0xff] %v777_v50  ;;  %v747_v60 = vmax.f32 %v665_v52, 0.0  ;;  %793 = vst [vmem:[#allocation2 + $0x19] sm:$0xff] %v760_v55  ;;  %v730_v61 = vmax.f32 %v580_v57, 0.0  ;;  %v1926_v63 = vpop.f32.mrb[4].mxu0 }
  0xf3   : > { %809 = vst [vmem:[#allocation2 + $0xd9] sm:$0xff] %v776_v56  ;;  %v746_v62 = vmax.f32 %v660_v58, 0.0  ;;  %v1950_v0 = vpop.f32.mrb[4].mxu1  ;;  %v763_v1 = vmin.f32 %v731_v59, 6.0  ;;  %v595_v3 = vadd.f32 %v1926_v63, %v2320_v34  ;;  %v589_v5 = vpop.f32.mrb[5].mxu0 }
  0xf4   : > { %v779_v2 = vmin.f32 %v747_v60, 6.0  ;;  %v675_v4 = vadd.f32 %v1950_v0, %v2320_v34  ;;  %v669_v6 = vpop.f32.mrb[5].mxu1  ;;  %v762_v7 = vmin.f32 %v730_v61, 6.0  ;;  %v590_v9 = vadd.f32 %v2320_v34, %v589_v5 }
  0xf5   : > { %v778_v8 = vmin.f32 %v746_v62, 6.0  ;;  %v670_v10 = vadd.f32 %v2320_v34, %v669_v6  ;;  %796 = vst [vmem:[#allocation2 + $0x39] sm:$0xff] %v763_v1  ;;  %v733_v11 = vmax.f32 %v595_v3, 0.0 }
  0xf6   : > { %812 = vst [vmem:[#allocation2 + $0xf9] sm:$0xff] %v779_v2  ;;  %v749_v12 = vmax.f32 %v675_v4, 0.0  ;;  %795 = vst [vmem:[#allocation2 + $0x31] sm:$0xff] %v762_v7  ;;  %v732_v13 = vmax.f32 %v590_v9, 0.0  ;;  %v1929_v15 = vpop.f32.mrb[6].mxu0 }
  0xf7   : > { %811 = vst [vmem:[#allocation2 + $0xf1] sm:$0xff] %v778_v8  ;;  %v748_v14 = vmax.f32 %v670_v10, 0.0  ;;  %v1953_v16 = vpop.f32.mrb[6].mxu1  ;;  %v765_v17 = vmin.f32 %v733_v11, 6.0  ;;  %v605_v19 = vadd.f32 %v1929_v15, %v2320_v34  ;;  %v599_v21 = vpop.f32.mrb[7].mxu0 }
  0xf8   : > { %v781_v18 = vmin.f32 %v749_v12, 6.0  ;;  %v685_v20 = vadd.f32 %v1953_v16, %v2320_v34  ;;  %v679_v22 = vpop.f32.mrb[7].mxu1  ;;  %v764_v23 = vmin.f32 %v732_v13, 6.0  ;;  %v600_v25 = vadd.f32 %v2320_v34, %v599_v21 }
  0xf9   : > { %v780_v24 = vmin.f32 %v748_v14, 6.0  ;;  %v680_v26 = vadd.f32 %v2320_v34, %v679_v22  ;;  %798 = vst [vmem:[#allocation2 + $0x51] sm:$0xff] %v765_v17  ;;  %v735_v27 = vmax.f32 %v605_v19, 0.0 }
  0xfa   : > { %814 = vst [vmem:[#allocation2 + $0x111] sm:$0xff] %v781_v18  ;;  %v751_v28 = vmax.f32 %v685_v20, 0.0  ;;  %797 = vst [vmem:[#allocation2 + $0x49] sm:$0xff] %v764_v23  ;;  %v734_v29 = vmax.f32 %v600_v25, 0.0  ;;  %v1932_v31 = vpop.f32.mrb[8].mxu0 }
  0xfb   : > { %813 = vst [vmem:[#allocation2 + $0x109] sm:$0xff] %v780_v24  ;;  %v750_v30 = vmax.f32 %v680_v26, 0.0  ;;  %v1956_v32 = vpop.f32.mrb[8].mxu1  ;;  %v767_v33 = vmin.f32 %v735_v27, 6.0  ;;  %v615_v36 = vadd.f32 %v1932_v31, %v2320_v34  ;;  %v609_v38 = vpop.f32.mrb[9].mxu0 }
  0xfc   : > { %v783_v35 = vmin.f32 %v751_v28, 6.0  ;;  %v695_v37 = vadd.f32 %v1956_v32, %v2320_v34  ;;  %v689_v39 = vpop.f32.mrb[9].mxu1  ;;  %v766_v40 = vmin.f32 %v734_v29, 6.0  ;;  %v610_v42 = vadd.f32 %v2320_v34, %v609_v38 }
  0xfd   : > { %v782_v41 = vmin.f32 %v750_v30, 6.0  ;;  %v690_v43 = vadd.f32 %v2320_v34, %v689_v39  ;;  %800 = vst [vmem:[#allocation2 + $0x69] sm:$0xff] %v767_v33  ;;  %v737_v44 = vmax.f32 %v615_v36, 0.0 }
  0xfe   : > { %816 = vst [vmem:[#allocation2 + $0x129] sm:$0xff] %v783_v35  ;;  %v753_v45 = vmax.f32 %v695_v37, 0.0  ;;  %799 = vst [vmem:[#allocation2 + $0x61] sm:$0xff] %v766_v40  ;;  %v736_v46 = vmax.f32 %v610_v42, 0.0  ;;  %v1935_v48 = vpop.f32.mrb[10].mxu0 }
  0xff   : > { %815 = vst [vmem:[#allocation2 + $0x121] sm:$0xff] %v782_v41  ;;  %v752_v47 = vmax.f32 %v690_v43, 0.0  ;;  %v1959_v49 = vpop.f32.mrb[10].mxu1  ;;  %v769_v50 = vmin.f32 %v737_v44, 6.0  ;;  %v625_v52 = vadd.f32 %v1935_v48, %v2320_v34  ;;  %v619_v54 = vpop.f32.mrb[11].mxu0 }
 0x100   : > { %v785_v51 = vmin.f32 %v753_v45, 6.0  ;;  %v705_v53 = vadd.f32 %v1959_v49, %v2320_v34  ;;  %v699_v55 = vpop.f32.mrb[11].mxu1  ;;  %v768_v56 = vmin.f32 %v736_v46, 6.0  ;;  %v620_v58 = vadd.f32 %v2320_v34, %v619_v54 }
 0x101   : > { %v784_v57 = vmin.f32 %v752_v47, 6.0  ;;  %v700_v59 = vadd.f32 %v2320_v34, %v699_v55  ;;  %802 = vst [vmem:[#allocation2 + $0x81] sm:$0xff] %v769_v50  ;;  %v739_v60 = vmax.f32 %v625_v52, 0.0 }
 0x102   : > { %818 = vst [vmem:[#allocation2 + $0x141] sm:$0xff] %v785_v51  ;;  %v755_v61 = vmax.f32 %v705_v53, 0.0  ;;  %801 = vst [vmem:[#allocation2 + $0x79] sm:$0xff] %v768_v56  ;;  %v738_v62 = vmax.f32 %v620_v58, 0.0  ;;  %v1938_v0 = vpop.f32.mrb[12].mxu0 }
 0x103   : > { %817 = vst [vmem:[#allocation2 + $0x139] sm:$0xff] %v784_v57  ;;  %v754_v63 = vmax.f32 %v700_v59, 0.0  ;;  %v1962_v1 = vpop.f32.mrb[12].mxu1  ;;  %v771_v2 = vmin.f32 %v739_v60, 6.0  ;;  %v635_v4 = vadd.f32 %v1938_v0, %v2320_v34  ;;  %v629_v6 = vpop.f32.mrb[13].mxu0 }
 0x104   : > { %v787_v3 = vmin.f32 %v755_v61, 6.0  ;;  %v715_v5 = vadd.f32 %v1962_v1, %v2320_v34  ;;  %v709_v7 = vpop.f32.mrb[13].mxu1  ;;  %v770_v8 = vmin.f32 %v738_v62, 6.0  ;;  %v630_v10 = vadd.f32 %v2320_v34, %v629_v6 }
 0x105   : > { %v786_v9 = vmin.f32 %v754_v63, 6.0  ;;  %v710_v11 = vadd.f32 %v2320_v34, %v709_v7  ;;  %804 = vst [vmem:[#allocation2 + $0x99] sm:$0xff] %v771_v2  ;;  %v741_v12 = vmax.f32 %v635_v4, 0.0 }
 0x106   : > { %820 = vst [vmem:[#allocation2 + $0x159] sm:$0xff] %v787_v3  ;;  %v757_v13 = vmax.f32 %v715_v5, 0.0  ;;  %803 = vst [vmem:[#allocation2 + $0x91] sm:$0xff] %v770_v8  ;;  %v740_v14 = vmax.f32 %v630_v10, 0.0  ;;  %v1941_v16 = vpop.f32.mrb[14].mxu0 }
 0x107   : > { %819 = vst [vmem:[#allocation2 + $0x151] sm:$0xff] %v786_v9  ;;  %v756_v15 = vmax.f32 %v710_v11, 0.0  ;;  %v1965_v17 = vpop.f32.mrb[14].mxu1  ;;  %v773_v18 = vmin.f32 %v741_v12, 6.0  ;;  %v645_v20 = vadd.f32 %v1941_v16, %v2320_v34  ;;  %v639_v22 = vpop.f32.mrb[15].mxu0 }
 0x108   : > { %v789_v19 = vmin.f32 %v757_v13, 6.0  ;;  %v725_v21 = vadd.f32 %v1965_v17, %v2320_v34  ;;  %v719_v23 = vpop.f32.mrb[15].mxu1  ;;  %v772_v24 = vmin.f32 %v740_v14, 6.0  ;;  %v640_v26 = vadd.f32 %v2320_v34, %v639_v22 }
 0x109   : > { %v788_v25 = vmin.f32 %v756_v15, 6.0  ;;  %v720_v27 = vadd.f32 %v2320_v34, %v719_v23  ;;  %806 = vst [vmem:[#allocation2 + $0xb1] sm:$0xff] %v773_v18  ;;  %v743_v28 = vmax.f32 %v645_v20, 0.0 }
 0x10a   : > { %822 = vst [vmem:[#allocation2 + $0x171] sm:$0xff] %v789_v19  ;;  %v759_v29 = vmax.f32 %v725_v21, 0.0  ;;  %805 = vst [vmem:[#allocation2 + $0xa9] sm:$0xff] %v772_v24  ;;  %v742_v30 = vmax.f32 %v640_v26, 0.0 }
 0x10b   : > { %821 = vst [vmem:[#allocation2 + $0x169] sm:$0xff] %v788_v25  ;;  %v758_v31 = vmax.f32 %v720_v27, 0.0  ;;  %v775_v32 = vmin.f32 %v743_v28, 6.0 }
 0x10c   : > { %v791_v33 = vmin.f32 %v759_v29, 6.0  ;;  %v774_v35 = vmin.f32 %v742_v30, 6.0 }
 0x10d   : > { %v790_v36 = vmin.f32 %v758_v31, 6.0  ;;  %808 = vst [vmem:[#allocation2 + $0xc9] sm:$0xff] %v775_v32 }
 0x10e   : > { %824 = vst [vmem:[#allocation2 + $0x189] sm:$0xff] %v791_v33  ;;  %807 = vst [vmem:[#allocation2 + $0xc1] sm:$0xff] %v774_v35 }
 0x10f   : > { %823 = vst [vmem:[#allocation2 + $0x181] sm:$0xff] %v790_v36 }
 0x110 PF: > { %v1366_v34 = vld [vmem:[%s3038_s5] sm:$0xff]  ;;  %v1367_v37 = vld [vmem:[%s3038_s5 + $0x8] sm:$0xff]  ;;  %v1368_v38 = vld [vmem:[%s3038_s5 + $0x10] sm:$0xff]  ;;  %s1734_s14 = smul.u32 192, %s2135_s24  ;;  %vm1568_vm2 = vcmask 31744  }
 0x111   : > { %v2022_v39 = vpack.c.bf16 %v1367_v37, %v1366_v34  ;;  %v1369_v40 = vld [vmem:[%s3038_s5 + $0x18] sm:$0xff]  ;;  %v1370_v41 = vld [vmem:[%s3038_s5 + $0x20] sm:$0xff]  ;;  %v1371_v43 = vld [vmem:[%s3038_s5 + $0x28] sm:$0xff] }
 0x112   : > { %v2026_v42 = vpack.c.bf16 %v1369_v40, %v1368_v38  ;;  %v1372_v44 = vld [vmem:[%s3038_s5 + $0x30] sm:$0xff]  ;;  %v1373_v45 = vld [vmem:[%s3038_s5 + $0x38] sm:$0xff]  ;;  %v1374_v46 = vld [vmem:[%s3038_s5 + $0x40] sm:$0xff]  ;;  %v2030_v52 = vpack.c.bf16 %v1371_v43, %v1370_v41  ;;  %s2408_s15 = scalar_lea.vmem [#allocation2], %s1734_s14 }
 0x113   : > { %2023 = vmatprep.subr.bf16.mxu0 %v2022_v39  ;;  %2056 = vmatprep.subr.bf16.mxu1 %v2022_v39  ;;  %v1375_v47 = vld [vmem:[%s3038_s5 + $0x48] sm:$0xff]  ;;  %v1376_v48 = vld [vmem:[%s3038_s5 + $0x50] sm:$0xff]  ;;  %v1377_v49 = vld [vmem:[%s3038_s5 + $0x58] sm:$0xff]  ;;  %v2423_v61 = vpack.c.bf16 %v1373_v45, %v1372_v44 }
 0x114   : > { %2025 = vmatpush3.bf16.msra.mxu0 %v2022_v39  ;;  %2064 = vmatpush3.bf16.msra.mxu1 %v2022_v39  ;;  %v1378_v50 = vld [vmem:[%s3038_s5 + $0x60] sm:$0xff]  ;;  %v1379_v51 = vld [vmem:[%s3038_s5 + $0x68] sm:$0xff]  ;;  %v1380_v53 = vld [vmem:[%s3038_s5 + $0x70] sm:$0xff]  ;;  %v2425_v62 = vpack.c.bf16 %v1375_v47, %v1374_v46  ;;  %v2427_v63 = vpack.c.bf16 %v1377_v49, %v1376_v48 }
 0x115   : > { %2027 = vmatprep.subr.bf16.mxu0 %v2026_v42  ;;  %2057 = vmatprep.subr.bf16.mxu1 %v2026_v42  ;;  %v1381_v54 = vld [vmem:[%s3038_s5 + $0x78] sm:$0xff]  ;;  %v2406_v55 = vld [vmem:[%s3036_s3] ss:$0 sm:$0xff]  ;;  %v2415_v58 = vld [vmem:[%s3036_s3 + $0x1] ss:$0 sm:$0xff]  ;;  %v2437_v4 = vpack.c.bf16 %v1379_v51, %v1378_v50 }
 0x116   : > { %v829_v56 = vld [vmem:[%s2408_s15] sm:$0xff]  ;;  %v1740_v3 = vld [vmem:[%s2408_s15 + $0x18] sm:$0xff]  ;;  %v2460_v14 = vld [vmem:[%s2408_s15 + $0x30] sm:$0xff]  ;;  %v2463_v16 = vpack.c.bf16 %v1381_v54, %v1380_v53 }
 0x117   : > { %v849_v57 = vmul.f32 %v2406_v55, %v829_v56  ;;  %v882_v59 = vld [vmem:[%s2408_s15 + $0x1] sm:$0xff]  ;;  %v1757_v7 = vld [vmem:[%s2408_s15 + $0x19] sm:$0xff]  ;;  %v851_v9 = vmul.f32 %v1740_v3, %v2406_v55  ;;  %v2475_v21 = vld [vmem:[%s2408_s15 + $0x31] sm:$0xff] }
 0x118   : > { %v2421_v60 = vld [vmem:[%s3036_s3 + $0x2] ss:$0 sm:$0xff]  ;;  %v902_v0 = vmul.f32 %v2415_v58, %v882_v59  ;;  %v2434_v2 = vld [vmem:[%s3036_s3 + $0x3] ss:$0 sm:$0xff]  ;;  %2029 = vmatpush3.bf16.msra.mxu0 %v2026_v42  ;;  %2065 = vmatpush3.bf16.msra.mxu1 %v2026_v42  ;;  %v2443_v6 = vld [vmem:[%s3036_s3 + $0x4] ss:$0 sm:$0xff]  ;;  %v904_v15 = vmul.f32 %v1757_v7, %v2415_v58 }
 0x119   : > { %v935_v1 = vld [vmem:[%s2408_s15 + $0x2] sm:$0xff]  ;;  %2031 = vmatprep.subr.bf16.mxu0 %v2030_v52  ;;  %2058 = vmatprep.subr.bf16.mxu1 %v2030_v52  ;;  %v1011_v11 = vmul.f32 %v2434_v2, %v1740_v3  ;;  %v1774_v12 = vld [vmem:[%s2408_s15 + $0x1a] sm:$0xff]  ;;  %v1064_v17 = vmul.f32 %v2443_v6, %v1757_v7  ;;  %v2494_v27 = vmul.f32 %v2460_v14, %v2434_v2  ;;  %v2516_v36 = vld [vmem:[%s2408_s15 + $0x32] sm:$0xff] }
 0x11a   : > { %v955_v5 = vmul.f32 %v2421_v60, %v935_v1  ;;  %v2449_v8 = vld [vmem:[%s3036_s3 + $0x5] ss:$0 sm:$0xff]  ;;  %v918_v10 = vadd.f32 %v902_v0, %v849_v57  ;;  %v2457_v13 = vld [vmem:[%s3036_s3 + $0x6] ss:$0 sm:$0xff]  ;;  %v2472_v20 = vld [vmem:[%s3036_s3 + $0x7] ss:$0 sm:$0xff]  ;;  %v2490_v26 = vmul.f32 %v1774_v12, %v2421_v60  ;;  %v2507_v32 = vadd.f32 %v904_v15, %v851_v9 }
 0x11b   : > { %v1117_v18 = vmul.f32 %v2449_v8, %v1774_v12  ;;  %v1173_v19 = vmul.f32 %v2457_v13, %v2460_v14  ;;  %v2479_v23 = vmul.f32 %v2472_v20, %v2475_v21  ;;  %v2484_v24 = vld [vmem:[%s3036_s3 + $0x8] ss:$0 sm:$0xff]  ;;  %v2487_v25 = vld [vmem:[%s2408_s15 + $0x60] sm:$0xff]  ;;  %v2505_v31 = vld [vmem:[%s2408_s15 + $0x78] sm:$0xff]  ;;  %v2511_v33 = vmul.f32 %v2475_v21, %v2443_v6 }
 0x11c   : > { %v971_v22 = vadd.f32 %v955_v5, %v918_v10  ;;  %2033 = vmatpush3.bf16.msra.mxu0 %v2030_v52  ;;  %2066 = vmatpush3.bf16.msra.mxu1 %v2030_v52  ;;  %v857_v28 = vmul.f32 %v2406_v55, %v2487_v25  ;;  %v2499_v29 = vld [vmem:[%s2408_s15 + $0x61] sm:$0xff]  ;;  %v2523_v38 = vld [vmem:[%s2408_s15 + $0x79] sm:$0xff]  ;;  %v1279_v39 = vmul.f32 %v2484_v24, %v2516_v36  ;;  %v2535_v43 = vld [vmem:[%s2408_s15 + $0x90] sm:$0xff] }
 0x11d   : > { %v2502_v30 = vld [vmem:[%s2408_s15 + $0x62] sm:$0xff]  ;;  %2035 = vmatprep.subr.bf16.mxu0 %v2423_v61  ;;  %2059 = vmatprep.subr.bf16.mxu1 %v2423_v61  ;;  %v910_v34 = vmul.f32 %v2415_v58, %v2499_v29  ;;  %v1019_v40 = vmul.f32 %v2434_v2, %v2505_v31  ;;  %v1072_v41 = vmul.f32 %v2443_v6, %v2523_v38  ;;  %v2532_v42 = vld [vmem:[%s2408_s15 + $0x7a] sm:$0xff]  ;;  %v936_v51 = vld [vmem:[%s2408_s15 + $0xa] sm:$0xff] }
 0x11e   : > { %v1027_v35 = vadd.f32 %v1011_v11, %v971_v22  ;;  %v963_v37 = vmul.f32 %v2421_v60, %v2502_v30  ;;  %v830_v44 = vld [vmem:[%s2408_s15 + $0x8] sm:$0xff]  ;;  %v2540_v45 = vmul.f32 %v2516_v36, %v2449_v8  ;;  %v1125_v48 = vmul.f32 %v2449_v8, %v2532_v42  ;;  %v2551_v52 = vld [vmem:[%s2408_s15 + $0x20] sm:$0xff]  ;;  %v2556_v53 = vld [vmem:[%s2408_s15 + $0x91] sm:$0xff] }
 0x11f   : > { %v926_v47 = vadd.f32 %v910_v34, %v857_v28  ;;  %v2546_v49 = vmul.f32 %v2457_v13, %v2535_v43  ;;  %v883_v50 = vld [vmem:[%s2408_s15 + $0x9] sm:$0xff]  ;;  %v2559_v54 = vld [vmem:[%s2408_s15 + $0x92] sm:$0xff]  ;;  %v850_v56 = vmul.f32 %v2406_v55, %v830_v44  ;;  %v956_v59 = vmul.f32 %v2421_v60, %v936_v51  ;;  %v2569_v3 = vld [vmem:[%s2408_s15 + $0x21] sm:$0xff] }
 0x120   : > { %v1080_v46 = vadd.f32 %v1064_v17, %v1027_v35  ;;  %2037 = vmatpush3.bf16.msra.mxu0 %v2423_v61  ;;  %2067 = vmatpush3.bf16.msra.mxu1 %v2423_v61  ;;  %v903_v57 = vmul.f32 %v2415_v58, %v883_v50  ;;  %v1234_v61 = vmul.f32 %v2472_v20, %v2556_v53  ;;  %v2572_v5 = vld [vmem:[%s2408_s15 + $0x22] sm:$0xff]  ;;  %v2586_v15 = vld [vmem:[%s2408_s15 + $0x38] sm:$0xff]  ;;  %v2618_v51 = vld [vmem:[%s3037_s4] ss:$0 sm:$0xff] }
 0x121   : > { %2039 = vmatprep.subr.bf16.mxu0 %v2425_v62  ;;  %2060 = vmatprep.subr.bf16.mxu1 %v2425_v62  ;;  %v979_v1 = vadd.f32 %v963_v37, %v926_v47  ;;  %v2575_v7 = vld [vmem:[%s2408_s15 + $0x68] sm:$0xff]  ;;  %v2579_v9 = vmul.f32 %v2484_v24, %v2559_v54  ;;  %v1012_v11 = vmul.f32 %v2434_v2, %v2551_v52  ;;  %v2599_v37 = vld [vmem:[%s2408_s15 + $0x80] sm:$0xff] }
 0x122   : > { %v1133_v0 = vadd.f32 %v1117_v18, %v1080_v46  ;;  %3047 = vst [vmem:[#allocation3_spill] sm:$0xff] %v2575_v7  ;;  %v919_v10 = vadd.f32 %v903_v57, %v850_v56  ;;  %v1065_v12 = vmul.f32 %v2443_v6, %v2569_v3  ;;  %v2589_v17 = vld [vmem:[%s2408_s15 + $0x69] sm:$0xff]  ;;  %v1118_v35 = vmul.f32 %v2449_v8, %v2572_v5  ;;  %v2611_v50 = vld [vmem:[%s2408_s15 + $0x39] sm:$0xff] }
 0x123   : > { %3048 = vst [vmem:[#allocation4_spill] sm:$0xff] %v2589_v17  ;;  %v2592_v18 = vld [vmem:[%s2408_s15 + $0x6a] sm:$0xff]  ;;  %v1035_v28 = vadd.f32 %v1019_v40, %v979_v1  ;;  %v1174_v34 = vmul.f32 %v2457_v13, %v2586_v15  ;;  %v858_v46 = vmul.f32 %v2406_v55, %v2575_v7  ;;  %v1227_v57 = vmul.f32 %v2472_v20, %v2611_v50 }
 0x124   : > { %3049 = vst [vmem:[#allocation5_spill] sm:$0xff] %v2592_v18  ;;  %v1189_v22 = vadd.f32 %v1173_v19, %v1133_v0  ;;  %2041 = vmatpush3.bf16.msra.mxu0 %v2425_v62  ;;  %2068 = vmatpush3.bf16.msra.mxu1 %v2425_v62  ;;  %v972_v44 = vadd.f32 %v956_v59, %v919_v10  ;;  %v2623_v59 = vld [vmem:[%s2408_s15 + $0x3a] sm:$0xff] }
 0x125   : > { %v911_v19 = vmul.f32 %v2415_v58, %v2589_v17  ;;  %2043 = vmatprep.subr.bf16.mxu0 %v2427_v63  ;;  %2061 = vmatprep.subr.bf16.mxu1 %v2427_v63  ;;  %v1088_v47 = vadd.f32 %v1072_v41, %v1035_v28  ;;  %v964_v62 = vmul.f32 %v2421_v60, %v2592_v18  ;;  %v2628_v41 = vld [vmem:[%s2408_s15 + $0x81] sm:$0xff] }
 0x126   : > { %v1242_v40 = vadd.f32 %v2479_v23, %v1189_v22  ;;  %v1028_v56 = vadd.f32 %v1012_v11, %v972_v44  ;;  %v1020_v23 = vmul.f32 %v2434_v2, %v2599_v37  ;;  %v1280_v22 = vmul.f32 %v2484_v24, %v2623_v59  ;;  %v2635_v28 = vld [vmem:[%s2408_s15 + $0x82] sm:$0xff] }
 0x127   : > { %v927_v0 = vadd.f32 %v911_v19, %v858_v46  ;;  %v1141_v10 = vadd.f32 %v1125_v48, %v1088_v47  ;;  %v1073_v11 = vmul.f32 %v2443_v6, %v2628_v41  ;;  %v2642_v48 = vld [vmem:[%s2408_s15 + $0x98] sm:$0xff]  ;;  %v973_v18 = vadd.f32 %v2490_v26, %v2507_v32  ;;  %v2661_v17 = vld [vmem:[%s2408_s15 + $0x48] sm:$0xff] }
 0x128   : > { %v1295_v1 = vadd.f32 %v1279_v39, %v1242_v40  ;;  %2045 = vmatpush3.bf16.msra.mxu0 %v2427_v63  ;;  %2069 = vmatpush3.bf16.msra.mxu1 %v2427_v63  ;;  %v1081_v44 = vadd.f32 %v1065_v12, %v1028_v56  ;;  %v1126_v39 = vmul.f32 %v2449_v8, %v2635_v28  ;;  %v2651_v63 = vld [vmem:[%s2408_s15 + $0x99] sm:$0xff] }
 0x129   : > { %v980_v46 = vadd.f32 %v964_v62, %v927_v0  ;;  %2047 = vmatprep.subr.bf16.mxu0 %v2437_v4  ;;  %2062 = vmatprep.subr.bf16.mxu1 %v2437_v4  ;;  %v1197_v40 = vadd.f32 %v2546_v49, %v1141_v10  ;;  %v1182_v47 = vmul.f32 %v2457_v13, %v2642_v48  ;;  %v2656_v0 = vld [vmem:[%s2408_s15 + $0x9a] sm:$0xff] }
 0x12a   : > { %v1318_v19 = vadd.f32 %v2618_v51, %v1295_v1  ;;  %v1134_v12 = vadd.f32 %v1118_v35, %v1081_v44  ;;  %v1235_v56 = vmul.f32 %v2472_v20, %v2651_v63  ;;  %v1288_v49 = vmul.f32 %v2484_v24, %v2656_v0 }
 0x12b   : > { %v1036_v62 = vadd.f32 %v1020_v23, %v980_v46  ;;  %v1250_v7 = vadd.f32 %v1234_v61, %v1197_v40  ;;  %v1175_v35 = vmul.f32 %v2457_v13, %v2661_v17  ;;  %v1029_v44 = vadd.f32 %v2494_v27, %v973_v18 }
 0x12c   : > { %v1334_v1 = vmax.f32 %v1318_v19, 0.0  ;;  %2049 = vmatpush3.bf16.msra.mxu0 %v2437_v4  ;;  %2070 = vmatpush3.bf16.msra.mxu1 %v2437_v4  ;;  %v1190_v23 = vadd.f32 %v1174_v34, %v1134_v12  ;;  %v859_v61 = vmul.f32 %v2505_v31, %v2406_v55  ;;  %v912_v46 = vmul.f32 %v2523_v38, %v2415_v58 }
 0x12d   : > { %v1089_v10 = vadd.f32 %v1073_v11, %v1036_v62  ;;  %2051 = vmatprep.subr.bf16.mxu0 %v2463_v16  ;;  %2063 = vmatprep.subr.bf16.mxu1 %v2463_v16  ;;  %v1303_v32 = vadd.f32 %v2579_v9, %v1250_v7  ;;  %v1082_v34 = vadd.f32 %v2511_v33, %v1029_v44  ;;  %v2679_v11 = vld [vmem:[%s2408_s15 + $0x49] sm:$0xff] }
 0x12e   : > { %v1350_v26 = vmin.f32 %v1334_v1, 6.0  ;;  %v1243_v19 = vadd.f32 %v1227_v57, %v1190_v23  ;;  %v965_v27 = vmul.f32 %v2532_v42, %v2421_v60  ;;  %v1228_v7 = vmul.f32 %v2472_v20, %v2679_v11  ;;  %v2692_v62 = vld [vmem:[%s2408_s15 + $0x4a] sm:$0xff] }
 0x12f   : > { %v1142_v4 = vadd.f32 %v1126_v39, %v1089_v10  ;;  %v1326_v18 = vadd.f32 %v2618_v51, %v1303_v32  ;;  %v928_v9 = vadd.f32 %v912_v46, %v859_v61  ;;  %v1021_v40 = vmul.f32 %v2535_v43, %v2434_v2 }
 0x130   : > { %1998 = vmatprep.mubr.f32.mxu0 %v1350_v26  ;;  %2053 = vmatpush3.bf16.msra.mxu0 %v2463_v16  ;;  %v1296_v33 = vadd.f32 %v1280_v22, %v1243_v19  ;;  %v1135_v39 = vadd.f32 %v2540_v45, %v1082_v34  ;;  %v1074_v23 = vmul.f32 %v2556_v53, %v2443_v6 }
 0x131   : > { %2071 = vmatpush3.bf16.msra.mxu1 %v2463_v16  ;;  %v1198_v57 = vadd.f32 %v1182_v47, %v1142_v4  ;;  %v1342_v12 = vmax.f32 %v1326_v18, 0.0  ;;  %v981_v1 = vadd.f32 %v965_v27, %v928_v9  ;;  %v1281_v32 = vmul.f32 %v2484_v24, %v2692_v62  ;;  %v2704_v4 = vld [vmem:[%s2408_s15 + $0xa8] sm:$0xff] }
 0x132   : > { %v1319_v10 = vadd.f32 %v2618_v51, %v1296_v33  ;;  %v1191_v26 = vadd.f32 %v1175_v35, %v1135_v39  ;;  %v1127_v45 = vmul.f32 %v2559_v54, %v2449_v8  ;;  %v852_v47 = vmul.f32 %v2551_v52, %v2406_v55  ;;  %v2716_v9 = vld [vmem:[%s2408_s15 + $0xa9] sm:$0xff] }
 0x133   : > { %v1251_v44 = vadd.f32 %v1235_v56, %v1198_v57  ;;  %v1358_v16 = vmin.f32 %v1342_v12, 6.0  ;;  %v1037_v22 = vadd.f32 %v1021_v40, %v981_v1  ;;  %v905_v56 = vmul.f32 %v2569_v3, %v2415_v58  ;;  %v2719_v40 = vld [vmem:[%s2408_s15 + $0xaa] sm:$0xff] }
 0x134   : > { %v1335_v61 = vmax.f32 %v1319_v10, 0.0  ;;  %v1244_v19 = vadd.f32 %v1228_v7, %v1191_v26  ;;  %v1183_v34 = vmul.f32 %v2457_v13, %v2704_v4  ;;  %v958_v27 = vmul.f32 %v2572_v5, %v2421_v60 }
 0x135   : > { %v1304_v46 = vadd.f32 %v1288_v49, %v1251_v44  ;;  %2010 = vmatprep.mubr.f32.mxu1 %v1358_v16  ;;  %v1090_v35 = vadd.f32 %v1074_v23, %v1037_v22  ;;  %v1014_v18 = vmul.f32 %v2586_v15, %v2434_v2  ;;  %v921_v3 = vadd.f32 %v905_v56, %v852_v47  ;;  %v2742_v56 = vld [vmem:[%s2408_s15 + $0x51] sm:$0xff] }
 0x136   : > { %v1351_v52 = vmin.f32 %v1335_v61, 6.0  ;;  %v1297_v7 = vadd.f32 %v1281_v32, %v1244_v19  ;;  %v1236_v57 = vmul.f32 %v2472_v20, %v2716_v9  ;;  %v1289_v5 = vmul.f32 %v2484_v24, %v2719_v40  ;;  %v2737_v61 = vld [vmem:[%s2408_s15 + $0x50] sm:$0xff] }
 0x137   : > { %v1327_v49 = vadd.f32 %v2618_v51, %v1304_v46  ;;  %v1143_v33 = vadd.f32 %v1127_v45, %v1090_v35  ;;  %v974_v1 = vadd.f32 %v958_v27, %v921_v3  ;;  %v1067_v23 = vmul.f32 %v2611_v50, %v2443_v6  ;;  %v2745_v35 = vld [vmem:[%s2408_s15 + $0x52] sm:$0xff] }
 0x138   : > { %1999 = vmatmul.mubr.f32.vlgmr.msra.gmra.mrb[0].mxu0 %v1351_v52  ;;  %v1320_v12 = vadd.f32 %v2618_v51, %v1297_v7  ;;  %v860_v44 = vmul.f32 %v2599_v37, %v2406_v55  ;;  %v913_v26 = vmul.f32 %v2628_v41, %v2415_v58  ;;  %v966_v32 = vmul.f32 %v2635_v28, %v2421_v60 }
 0x139   : > { %v1343_v39 = vmax.f32 %v1327_v49, 0.0  ;;  %v1199_v10 = vadd.f32 %v1183_v34, %v1143_v33  ;;  %v1030_v45 = vadd.f32 %v1014_v18, %v974_v1  ;;  %v1120_v47 = vmul.f32 %v2623_v59, %v2449_v8 }
 0x13a   : > { %v1336_v22 = vmax.f32 %v1320_v12, 0.0  ;;  %v1176_v19 = vmul.f32 %v2457_v13, %v2737_v61  ;;  %v929_v34 = vadd.f32 %v913_v26, %v860_v44  ;;  %v1022_v27 = vmul.f32 %v2642_v48, %v2434_v2 }
 0x13b   : > { %v1359_v16 = vmin.f32 %v1343_v39, 6.0  ;;  %v1252_v46 = vadd.f32 %v1236_v57, %v1199_v10  ;;  %v1083_v52 = vadd.f32 %v1067_v23, %v1030_v45  ;;  %v1229_v49 = vmul.f32 %v2472_v20, %v2742_v56  ;;  %v2760_v23 = vld [vmem:[%s2408_s15 + $0xb0] sm:$0xff] }
 0x13c   : > { %v1352_v18 = vmin.f32 %v1336_v22, 6.0  ;;  %v1282_v7 = vmul.f32 %v2484_v24, %v2745_v35  ;;  %v982_v33 = vadd.f32 %v966_v32, %v929_v34  ;;  %v1075_v57 = vmul.f32 %v2651_v63, %v2443_v6  ;;  %v2763_v10 = vld [vmem:[%s2408_s15 + $0xb1] sm:$0xff] }
 0x13d   : > { %2011 = vmatmul.mubr.f32.vlgmr.msra.gmra.mrb[0].mxu1 %v1359_v16  ;;  %v1305_v3 = vadd.f32 %v1289_v5, %v1252_v46  ;;  %v853_v39 = vmul.f32 %v2460_v14, %v2406_v55  ;;  %v1136_v12 = vadd.f32 %v1120_v47, %v1083_v52  ;;  %v1128_v1 = vmul.f32 %v2656_v0, %v2449_v8  ;;  %v2775_v22 = vld [vmem:[%s2408_s15 + $0xb2] sm:$0xff] }
 0x13e   : > { %2001 = vmatprep.mubr.f32.mxu0 %v1352_v18  ;;  %v906_v44 = vmul.f32 %v2475_v21, %v2415_v58  ;;  %v959_v5 = vmul.f32 %v2516_v36, %v2421_v60  ;;  %v1038_v32 = vadd.f32 %v1022_v27, %v982_v33  ;;  %v1184_v14 = vmul.f32 %v2457_v13, %v2760_v23 }
 0x13f   : > { %v1328_v26 = vadd.f32 %v2618_v51, %v1305_v3  ;;  %v1237_v16 = vmul.f32 %v2472_v20, %v2763_v10  ;;  %v1192_v45 = vadd.f32 %v1176_v19, %v1136_v12  ;;  %v1290_v47 = vmul.f32 %v2484_v24, %v2775_v22 }
 0x140   : > { %v922_v46 = vadd.f32 %v906_v44, %v853_v39  ;;  %v1015_v21 = vmul.f32 %v2661_v17, %v2434_v2  ;;  %v1091_v34 = vadd.f32 %v1075_v57, %v1038_v32  ;;  %v1068_v27 = vmul.f32 %v2679_v11, %v2443_v6 }
 0x141   : > { %v1344_v36 = vmax.f32 %v1328_v26, 0.0  ;;  %v861_v18 = vmul.f32 %v2535_v43, %v2406_v55  ;;  %v1245_v52 = vadd.f32 %v1229_v49, %v1192_v45  ;;  %v914_v19 = vmul.f32 %v2556_v53, %v2415_v58 }
 0x142   : > { %v975_v3 = vadd.f32 %v959_v5, %v922_v46  ;;  %v967_v33 = vmul.f32 %v2559_v54, %v2421_v60  ;;  %v1144_v12 = vadd.f32 %v1128_v1, %v1091_v34  ;;  %v1121_v44 = vmul.f32 %v2692_v62, %v2449_v8  ;;  %v2807_v34 = vld [vmem:[%s2408_s15 + $0xc0] sm:$0xff] }
 0x143   : > { %v1360_v39 = vmin.f32 %v1344_v36, 6.0  ;;  %v1177_v57 = vmul.f32 %v2457_v13, %v2487_v25  ;;  %v1298_v26 = vadd.f32 %v1282_v7, %v1245_v52  ;;  %v930_v43 = vadd.f32 %v914_v19, %v861_v18 }
 0x144   : > { %v1031_v32 = vadd.f32 %v1015_v21, %v975_v3  ;;  %v1023_v49 = vmul.f32 %v2704_v4, %v2434_v2  ;;  %v1200_v53 = vadd.f32 %v1184_v14, %v1144_v12  ;;  %v1230_v54 = vmul.f32 %v2472_v20, %v2499_v29  ;;  %v2821_v12 = vld [vmem:[%s2408_s15 + $0xc2] sm:$0xff] }
 0x145   : > { %2013 = vmatprep.mubr.f32.mxu1 %v1360_v39  ;;  %v1283_v1 = vmul.f32 %v2484_v24, %v2502_v30  ;;  %v1076_v5 = vmul.f32 %v2716_v9, %v2443_v6  ;;  %v1321_v45 = vadd.f32 %v2618_v51, %v1298_v26  ;;  %v983_v46 = vadd.f32 %v967_v33, %v930_v43  ;;  %v2816_v33 = vld [vmem:[%s2408_s15 + $0xc1] sm:$0xff] }
 0x146   : > { %v1084_v7 = vadd.f32 %v1068_v27, %v1031_v32  ;;  %v854_v21 = vmul.f32 %v2586_v15, %v2406_v55  ;;  %v1253_v36 = vadd.f32 %v1237_v16, %v1200_v53  ;;  %v1129_v14 = vmul.f32 %v2719_v40, %v2449_v8 }
 0x147   : > { %v907_v18 = vmul.f32 %v2611_v50, %v2415_v58  ;;  %v960_v52 = vmul.f32 %v2623_v59, %v2421_v60  ;;  %v1337_v3 = vmax.f32 %v1321_v45, 0.0  ;;  %v1039_v39 = vadd.f32 %v1023_v49, %v983_v46 }
 0x148   : > { %v1137_v19 = vadd.f32 %v1121_v44, %v1084_v7  ;;  %v1185_v27 = vmul.f32 %v2457_v13, %v2807_v34  ;;  %v1306_v15 = vadd.f32 %v1290_v47, %v1253_v36  ;;  %v1238_v16 = vmul.f32 %v2472_v20, %v2816_v33 }
 0x149   : > { %v923_v26 = vadd.f32 %v907_v18, %v854_v21  ;;  %v1016_v50 = vmul.f32 %v2737_v61, %v2434_v2  ;;  %v1353_v32 = vmin.f32 %v1337_v3, 6.0  ;;  %v1092_v43 = vadd.f32 %v1076_v5, %v1039_v39 }
 0x14a   : > { %v1193_v59 = vadd.f32 %v1177_v57, %v1137_v19  ;;  %v1291_v44 = vmul.f32 %v2484_v24, %v2821_v12  ;;  %v1329_v49 = vadd.f32 %v2618_v51, %v1306_v15  ;;  %v1069_v47 = vmul.f32 %v2742_v56, %v2443_v6 }
 0x14b   : > { %v976_v53 = vadd.f32 %v960_v52, %v923_v26  ;;  %v862_v45 = vmul.f32 %v2642_v48, %v2406_v55  ;;  %2002 = vmatmul.mubr.f32.gmra.mrb[2].mxu0 %v1353_v32  ;;  %v1145_v46 = vadd.f32 %v1129_v14, %v1092_v43  ;;  %v915_v21 = vmul.f32 %v2651_v63, %v2415_v58  ;;  %v3050_v52 = vld [vmem:[#allocation3_spill] sm:$0xff]  ;;  %v3051_v63 = vld [vmem:[#allocation4_spill] sm:$0xff]  ;;  %v3052_v26 = vld [vmem:[#allocation5_spill] sm:$0xff] }
 0x14c   : > { %v1246_v7 = vadd.f32 %v1230_v54, %v1193_v59  ;;  %v968_v57 = vmul.f32 %v2656_v0, %v2421_v60  ;;  %v1345_v5 = vmax.f32 %v1329_v49, 0.0  ;;  %v1122_v18 = vmul.f32 %v2745_v35, %v2449_v8 }
 0x14d   : > { %v1032_v36 = vadd.f32 %v1016_v50, %v976_v53  ;;  %v1178_v3 = vmul.f32 %v2457_v13, %v3050_v52  ;;  %v1201_v39 = vadd.f32 %v1185_v27, %v1145_v46  ;;  %v931_v48 = vadd.f32 %v915_v21, %v862_v45  ;;  %v2858_v21 = vld [vmem:[%s2408_s15 + $0xc8] sm:$0xff] }
 0x14e   : > { %v1299_v19 = vadd.f32 %v1283_v1, %v1246_v7  ;;  %v1024_v54 = vmul.f32 %v2760_v23, %v2434_v2  ;;  %v1361_v14 = vmin.f32 %v1345_v5, 6.0  ;;  %v1231_v0 = vmul.f32 %v2472_v20, %v3051_v63 }
 0x14f   : > { %v1085_v15 = vadd.f32 %v1069_v47, %v1032_v36  ;;  %v1284_v50 = vmul.f32 %v2484_v24, %v3052_v26  ;;  %v1254_v59 = vadd.f32 %v1238_v16, %v1201_v39  ;;  %v984_v43 = vadd.f32 %v968_v57, %v931_v48  ;;  %v2871_v39 = vld [vmem:[%s2408_s15 + $0xca] sm:$0xff] }
 0x150   : > { %v1322_v32 = vadd.f32 %v2618_v51, %v1299_v19  ;;  %v1077_v1 = vmul.f32 %v2763_v10, %v2443_v6  ;;  %2014 = vmatmul.mubr.f32.gmra.mrb[2].mxu1 %v1361_v14  ;;  %v855_v49 = vmul.f32 %v2661_v17, %v2406_v55  ;;  %v908_v53 = vmul.f32 %v2679_v11, %v2415_v58  ;;  %v2863_v17 = vld [vmem:[%s2408_s15 + $0xc9] sm:$0xff] }
 0x151   : > { %v1138_v27 = vadd.f32 %v1122_v18, %v1085_v15  ;;  %v961_v47 = vmul.f32 %v2692_v62, %v2421_v60  ;;  %v1307_v7 = vadd.f32 %v1291_v44, %v1254_v59  ;;  %v1040_v46 = vadd.f32 %v1024_v54, %v984_v43 }
 0x152   : > { %v1338_v45 = vmax.f32 %v1322_v32, 0.0  ;;  %v1130_v16 = vmul.f32 %v2775_v22, %v2449_v8  ;;  %v1186_v5 = vmul.f32 %v2457_v13, %v2858_v21  ;;  %v924_v36 = vadd.f32 %v908_v53, %v855_v49 }
 0x153   : > { %v1194_v57 = vadd.f32 %v1178_v3, %v1138_v27  ;;  %v1017_v11 = vmul.f32 %v2434_v2, %v2487_v25  ;;  %v1330_v62 = vadd.f32 %v2618_v51, %v1307_v7  ;;  %v1093_v44 = vadd.f32 %v1077_v1, %v1040_v46 }
 0x154   : > { %v1354_v18 = vmin.f32 %v1338_v45, 6.0  ;;  %v1239_v19 = vmul.f32 %v2472_v20, %v2863_v17  ;;  %v1292_v3 = vmul.f32 %v2484_v24, %v2871_v39  ;;  %v977_v54 = vadd.f32 %v961_v47, %v924_v36 }
 0x155   : > { %v1247_v48 = vadd.f32 %v1231_v0, %v1194_v57  ;;  %v1070_v14 = vmul.f32 %v2443_v6, %v2499_v29  ;;  %v1346_v15 = vmax.f32 %v1330_v62, 0.0  ;;  %v1146_v25 = vadd.f32 %v1130_v16, %v1093_v44  ;;  %v1807_v57 = vld [vmem:[%s2408_s15 + $0xd8] sm:$0xff] }
 0x156   : > { %2004 = vmatprep.mubr.f32.mxu0 %v1354_v18  ;;  %v863_v32 = vmul.f32 %v2704_v4, %v2406_v55  ;;  %v916_v59 = vmul.f32 %v2716_v9, %v2415_v58  ;;  %v1033_v1 = vadd.f32 %v1017_v11, %v977_v54  ;;  %v1123_v0 = vmul.f32 %v2449_v8, %v2502_v30 }
 0x157   : > { %v1300_v43 = vadd.f32 %v1284_v50, %v1247_v48  ;;  %v969_v27 = vmul.f32 %v2719_v40, %v2421_v60  ;;  %v1362_v49 = vmin.f32 %v1346_v15, 6.0  ;;  %v1202_v29 = vadd.f32 %v1186_v5, %v1146_v25  ;;  %v1824_v5 = vld [vmem:[%s2408_s15 + $0xd9] sm:$0xff] }
 0x158   : > { %v932_v53 = vadd.f32 %v916_v59, %v863_v32  ;;  %v1025_v47 = vmul.f32 %v2807_v34, %v2434_v2  ;;  %v1086_v45 = vadd.f32 %v1070_v14, %v1033_v1  ;;  %v1179_v9 = vmul.f32 %v2457_v13, %v2505_v31 }
 0x159   : > { %v1323_v4 = vadd.f32 %v2618_v51, %v1300_v43  ;;  %v1232_v30 = vmul.f32 %v2472_v20, %v2523_v38  ;;  %2016 = vmatprep.mubr.f32.mxu1 %v1362_v49  ;;  %v1255_v40 = vadd.f32 %v1239_v19, %v1202_v29  ;;  %v1285_v50 = vmul.f32 %v2484_v24, %v2532_v42  ;;  %v1841_v42 = vld [vmem:[%s2408_s15 + $0xda] sm:$0xff] }
 0x15a   : > { %v985_v7 = vadd.f32 %v969_v27, %v932_v53  ;;  %v1078_v46 = vmul.f32 %v2816_v33, %v2443_v6  ;;  %v1139_v16 = vadd.f32 %v1123_v0, %v1086_v45  ;;  %v856_v31 = vmul.f32 %v2737_v61, %v2406_v55 }
 0x15b   : > { %v1339_v34 = vmax.f32 %v1323_v4, 0.0  ;;  %v909_v36 = vmul.f32 %v2742_v56, %v2415_v58  ;;  %v1308_v38 = vadd.f32 %v1292_v3, %v1255_v40  ;;  %v1131_v18 = vmul.f32 %v2821_v12, %v2449_v8 }
 0x15c   : > { %v1041_v11 = vadd.f32 %v1025_v47, %v985_v7  ;;  %v962_v62 = vmul.f32 %v2745_v35, %v2421_v60  ;;  %v1195_v44 = vadd.f32 %v1179_v9, %v1139_v16  ;;  %v1018_v48 = vmul.f32 %v2434_v2, %v3050_v52 }
 0x15d   : > { %v1355_v33 = vmin.f32 %v1339_v34, 6.0  ;;  %v925_v19 = vadd.f32 %v909_v36, %v856_v31  ;;  %v1331_v61 = vadd.f32 %v2618_v51, %v1308_v38  ;;  %v1187_v56 = vmul.f32 %v2457_v13, %v1807_v57 }
 0x15e   : > { %v1094_v54 = vadd.f32 %v1078_v46, %v1041_v11  ;;  %v1240_v3 = vmul.f32 %v2472_v20, %v1824_v5  ;;  %v1248_v14 = vadd.f32 %v1232_v30, %v1195_v44  ;;  %v1293_v12 = vmul.f32 %v2484_v24, %v1841_v42 }
 0x15f   : > { %2005 = vmatmul.mubr.f32.gmra.mrb[4].mxu0 %v1355_v33  ;;  %v978_v15 = vadd.f32 %v962_v62, %v925_v19  ;;  %v1071_v35 = vmul.f32 %v2443_v6, %v3051_v63  ;;  %v1347_v25 = vmax.f32 %v1331_v61, 0.0  ;;  %v864_v52 = vmul.f32 %v2760_v23, %v2406_v55 }
 0x160   : > { %v1147_v32 = vadd.f32 %v1131_v18, %v1094_v54  ;;  %v917_v59 = vmul.f32 %v2763_v10, %v2415_v58  ;;  %v1301_v43 = vadd.f32 %v1285_v50, %v1248_v14  ;;  %v1124_v0 = vmul.f32 %v2449_v8, %v3052_v26  ;;  %v1825_v50 = vld [vmem:[%s2408_s15 + $0xe1] sm:$0xff] }
 0x161   : > { %v1034_v1 = vadd.f32 %v1018_v48, %v978_v15  ;;  %v970_v27 = vmul.f32 %v2775_v22, %v2421_v60  ;;  %v1363_v49 = vmin.f32 %v1347_v25, 6.0  ;;  %v1026_v53 = vmul.f32 %v2858_v21, %v2434_v2  ;;  %v1808_v2 = vld [vmem:[%s2408_s15 + $0xe0] sm:$0xff] }
 0x162   : > { %v1203_v29 = vadd.f32 %v1187_v56, %v1147_v32  ;;  %v933_v63 = vadd.f32 %v917_v59, %v864_v52  ;;  %v1324_v55 = vadd.f32 %v2618_v51, %v1301_v43  ;;  %v1180_v58 = vmul.f32 %v2457_v13, %v2599_v37 }
 0x163   : > { %v1087_v23 = vadd.f32 %v1071_v35, %v1034_v1  ;;  %2017 = vmatmul.mubr.f32.gmra.mrb[4].mxu1 %v1363_v49  ;;  %v1079_v47 = vmul.f32 %v2863_v17, %v2443_v6  ;;  %v1233_v4 = vmul.f32 %v2472_v20, %v2628_v41  ;;  %v1132_v9 = vmul.f32 %v2871_v39, %v2449_v8  ;;  %v1842_v41 = vld [vmem:[%s2408_s15 + $0xe2] sm:$0xff]  ;;  %s1850_s15 = sshll.u32 %s2135_s24, 7 }
 0x164   : > { %v1256_v10 = vadd.f32 %v1240_v3, %v1203_v29  ;;  %v986_v26 = vadd.f32 %v970_v27, %v933_v63  ;;  %v1340_v60 = vmax.f32 %v1324_v55, 0.0  ;;  %v1286_v40 = vmul.f32 %v2484_v24, %v2635_v28  ;;  %s2947_s14 = scalar_lea.vmem %s2230_s13, %s1850_s15 }
 0x165   : > { %v1140_v22 = vadd.f32 %v1124_v0, %v1087_v23  ;;  %v1188_v7 = vmul.f32 %v2457_v13, %v1808_v2  ;;  %v1241_v57 = vmul.f32 %v2472_v20, %v1825_v50  ;;  %v1294_v28 = vmul.f32 %v2484_v24, %v1842_v41  ;;  %v2952_v20 = vld [vmem:[%s3039_s6] ss:$0 sm:$0xff]  ;;  %v1545_v56 = vld [vmem:[%s2947_s14 + $0x48] sm:$0xff]  ;;  %v1539_v59 = vld [vmem:[%s2947_s14 + $0x18] sm:$0xff] }
 0x166   : > { %v1309_v21 = vadd.f32 %v1293_v12, %v1256_v10  ;;  %v1042_v45 = vadd.f32 %v1026_v53, %v986_v26  ;;  %v1356_v30 = vmin.f32 %v1340_v60, 6.0  ;;  %v1536_v19 = vld [vmem:[%s2947_s14] sm:$0xff]  ;;  %v1538_v0 = vld [vmem:[%s2947_s14 + $0x10] sm:$0xff]  ;;  %v1547_v53 = vld [vmem:[%s2947_s14 + $0x58] sm:$0xff] }
 0x167   : > { %v1196_v37 = vadd.f32 %v1180_v58, %v1140_v22  ;;  %v1544_v15 = vld [vmem:[%s2947_s14 + $0x40] sm:$0xff]  ;;  %v1546_v58 = vld [vmem:[%s2947_s14 + $0x50] sm:$0xff]  ;;  %v1541_v22 = vld [vmem:[%s2947_s14 + $0x28] sm:$0xff] }
 0x168   : > { %v1332_v6 = vadd.f32 %v2618_v51, %v1309_v21  ;;  %v1095_v17 = vadd.f32 %v1079_v47, %v1042_v45  ;;  %2007 = vmatprep.mubr.f32.mxu0 %v1356_v30  ;;  %v1540_v21 = vld [vmem:[%s2947_s14 + $0x20] sm:$0xff] }
 0x169   : > { %v1249_v46 = vadd.f32 %v1233_v4, %v1196_v37 }
 0x16a   : > { %v1348_v34 = vmax.f32 %v1332_v6, 0.0  ;;  %v1148_v16 = vadd.f32 %v1132_v9, %v1095_v17  ;;  %v1548_v17 = vld [vmem:[%s2947_s14 + $0x60] sm:$0xff] }
 0x16b   : > { %v1302_v8 = vadd.f32 %v1286_v40, %v1249_v46  ;;  %v1549_v40 = vld [vmem:[%s2947_s14 + $0x68] sm:$0xff] }
 0x16c   : > { %v1364_v39 = vmin.f32 %v1348_v34, 6.0  ;;  %v1204_v5 = vadd.f32 %v1188_v7, %v1148_v16  ;;  %v1543_v16 = vld [vmem:[%s2947_s14 + $0x38] sm:$0xff] }
 0x16d   : > { %v1325_v31 = vadd.f32 %v2618_v51, %v1302_v8 }
 0x16e   : > { %2019 = vmatprep.mubr.f32.mxu1 %v1364_v39  ;;  %v1257_v36 = vadd.f32 %v1241_v57, %v1204_v5  ;;  %v1542_v39 = vld [vmem:[%s2947_s14 + $0x30] sm:$0xff] }
 0x16f   : > { %v1341_v38 = vmax.f32 %v1325_v31, 0.0 }
 0x170   : > { %v1310_v13 = vadd.f32 %v1294_v28, %v1257_v36 }
 0x171   : > { %v1357_v11 = vmin.f32 %v1341_v38, 6.0  ;;  %v1551_v38 = vld [vmem:[%s2947_s14 + $0x78] sm:$0xff] }
 0x172   : > { %v1333_v18 = vadd.f32 %v2618_v51, %v1310_v13  ;;  %v1537_v51 = vld [vmem:[%s2947_s14 + $0x8] sm:$0xff] }
 0x173   : > { %2008 = vmatmul.mubr.f32.gmra.mrb[6].mxu0 %v1357_v11 }
 0x174   : > { %v1349_v42 = vmax.f32 %v1333_v18, 0.0  ;;  %v1550_v18 = vld [vmem:[%s2947_s14 + $0x70] sm:$0xff] }
 0x176   : > { %v1365_v62 = vmin.f32 %v1349_v42, 6.0 }
 0x178   : > { %2020 = vmatmul.mubr.f32.gmra.mrb[6].mxu1 %v1365_v62 }
 0x20b   : > { %v2000_v24 = vpop.f32.mrb[0].mxu0 }
 0x20c   : > { %v1461_v33 = vadd.f32 %v2000_v24, %v2952_v20  ;;  %v1455_v44 = vpop.f32.mrb[1].mxu0 }
 0x20d   : > { %v1456_v48 = vadd.f32 %v2952_v20, %v1455_v44 }
 0x20e   : > { %v1553_v61 = vadd.f32 %v1537_v51, %v1461_v33 }
 0x20f   : > { %v1552_v3 = vadd.f32 %v1536_v19, %v1456_v48 }
 0x210   : > { %v2012_v54 = vpop.f32.mrb[0].mxu1  ;;  %1570 = vst.msk [vmem:[%s2235_s19 + $0x8] sm:$0xff] %vm1568_vm2, %v1553_v61 }
 0x211   : > { %v1501_v14 = vadd.f32 %v2012_v54, %v2952_v20  ;;  %v1495_v12 = vpop.f32.mrb[1].mxu1  ;;  %1569 = vst.msk [vmem:[%s2235_s19] sm:$0xff] %vm1568_vm2, %v1552_v3 }
 0x212   : > { %v1496_v35 = vadd.f32 %v2952_v20, %v1495_v12 }
 0x213   : > { %v1561_v25 = vadd.f32 %v1545_v56, %v1501_v14 }
 0x214   : > { %v1560_v32 = vadd.f32 %v1544_v15, %v1496_v35 }
 0x215   : > { %1578 = vst.msk [vmem:[%s2235_s19 + $0x48] sm:$0xff] %vm1568_vm2, %v1561_v25 }
 0x216   : > { %1577 = vst.msk [vmem:[%s2235_s19 + $0x40] sm:$0xff] %vm1568_vm2, %v1560_v32 }
 0x21e   : > { %v2003_v52 = vpop.f32.mrb[2].mxu0 }
 0x21f   : > { %v1471_v43 = vadd.f32 %v2003_v52, %v2952_v20  ;;  %v1465_v1 = vpop.f32.mrb[3].mxu0 }
 0x220   : > { %v1466_v27 = vadd.f32 %v2952_v20, %v1465_v1 }
 0x221   : > { %v1555_v49 = vadd.f32 %v1539_v59, %v1471_v43 }
 0x222   : > { %v1554_v29 = vadd.f32 %v1538_v0, %v1466_v27 }
 0x223   : > { %1572 = vst.msk [vmem:[%s2235_s19 + $0x18] sm:$0xff] %vm1568_vm2, %v1555_v49  ;;  %v2015_v63 = vpop.f32.mrb[2].mxu1 }
 0x224   : > { %v1511_v55 = vadd.f32 %v2015_v63, %v2952_v20  ;;  %1571 = vst.msk [vmem:[%s2235_s19 + $0x10] sm:$0xff] %vm1568_vm2, %v1554_v29  ;;  %v1505_v23 = vpop.f32.mrb[3].mxu1 }
 0x225   : > { %v1506_v10 = vadd.f32 %v2952_v20, %v1505_v23 }
 0x226   : > { %v1563_v26 = vadd.f32 %v1547_v53, %v1511_v55 }
 0x227   : > { %v1562_v47 = vadd.f32 %v1546_v58, %v1506_v10 }
 0x228   : > { %1580 = vst.msk [vmem:[%s2235_s19 + $0x58] sm:$0xff] %vm1568_vm2, %v1563_v26 }
 0x229   : > { %1579 = vst.msk [vmem:[%s2235_s19 + $0x50] sm:$0xff] %vm1568_vm2, %v1562_v47 }
 0x232   : > { %v2006_v60 = vpop.f32.mrb[4].mxu0 }
 0x233   : > { %v1481_v4 = vadd.f32 %v2006_v60, %v2952_v20  ;;  %v1475_v2 = vpop.f32.mrb[5].mxu0 }
 0x234   : > { %v1476_v45 = vadd.f32 %v2952_v20, %v1475_v2 }
 0x235   : > { %v1557_v9 = vadd.f32 %v1541_v22, %v1481_v4 }
 0x236   : > { %v1556_v30 = vadd.f32 %v1540_v21, %v1476_v45  ;;  %v2018_v37 = vpop.f32.mrb[4].mxu1 }
 0x237   : > { %1574 = vst.msk [vmem:[%s2235_s19 + $0x28] sm:$0xff] %vm1568_vm2, %v1557_v9  ;;  %v1521_v50 = vadd.f32 %v2018_v37, %v2952_v20  ;;  %v1515_v6 = vpop.f32.mrb[5].mxu1 }
 0x238   : > { %1573 = vst.msk [vmem:[%s2235_s19 + $0x20] sm:$0xff] %vm1568_vm2, %v1556_v30  ;;  %v1516_v7 = vadd.f32 %v2952_v20, %v1515_v6 }
 0x239   : > { %v1565_v46 = vadd.f32 %v1549_v40, %v1521_v50 }
 0x23a   : > { %v1564_v41 = vadd.f32 %v1548_v17, %v1516_v7 }
 0x23b   : > { %1582 = vst.msk [vmem:[%s2235_s19 + $0x68] sm:$0xff] %vm1568_vm2, %v1565_v46 }
 0x23c   : > { %1581 = vst.msk [vmem:[%s2235_s19 + $0x60] sm:$0xff] %vm1568_vm2, %v1564_v41 }
 0x246   : > { %v2009_v34 = vpop.f32.mrb[6].mxu0 }
 0x247   : > { %v1491_v57 = vadd.f32 %v2009_v34, %v2952_v20  ;;  %v1485_v8 = vpop.f32.mrb[7].mxu0 }
 0x248   : > { %v1486_v5 = vadd.f32 %v2952_v20, %v1485_v8 }
 0x249   : > { %v1559_v28 = vadd.f32 %v1543_v16, %v1491_v57 }
 0x24a   : > { %v1558_v31 = vadd.f32 %v1542_v39, %v1486_v5 }
 0x24b   : > { %1576 = vst.msk [vmem:[%s2235_s19 + $0x38] sm:$0xff] %vm1568_vm2, %v1559_v28  ;;  %v2021_v36 = vpop.f32.mrb[6].mxu1 }
 0x24c   : > { %v1531_v13 = vadd.f32 %v2021_v36, %v2952_v20  ;;  %1575 = vst.msk [vmem:[%s2235_s19 + $0x30] sm:$0xff] %vm1568_vm2, %v1558_v31  ;;  %v1525_v11 = vpop.f32.mrb[7].mxu1 }
 0x24d   : > { %v1526_v42 = vadd.f32 %v2952_v20, %v1525_v11 }
 0x24e   : > { %v1567_v62 = vadd.f32 %v1551_v38, %v1531_v13 }
 0x24f   : > { %v1566_v24 = vadd.f32 %v1550_v18, %v1526_v42 }
 0x250   : > { %1584 = vst.msk [vmem:[%s2235_s19 + $0x78] sm:$0xff] %vm1568_vm2, %v1567_v62 }
 0x251   : > { %1583 = vst.msk [vmem:[%s2235_s19 + $0x70] sm:$0xff] %vm1568_vm2, %v1566_v24 }
 0x252 PF: > { %s17_s28 = sadd.s32 1, %s2151_s28   ;;  %s3053_s24 = smov %s2143_s26 }
 0x253   : > { %p14_p8 = scmp.ge.s32.totalorder %s17_s28, 6   ;;  %s3054_s25 = smov %s2147_s27 }
 0x254   : > { %s3055_s26 = smov %s3058_s29  ;;  %s3056_s27 = smov %s3062_s30 }
 0x255   :  { %16 = sbr.rel (!%p14_p8) target bundleno = 3 (0x3), region = 87 }

</bundles_post_ra>
